<compile_context>
chip_gen: v7x
topology: tpu7x:2x2x1
jax: 0.10.0
libtpu: 0.0.40
codegen_flags: <defaults>
</compile_context>

<pallas_src>
import functools

import jax
import jax.numpy as jnp
from jax.experimental import pallas as pl
from jax.experimental.pallas import tpu as pltpu


# ------------------------------ Pallas kernel --------------------------------

def _up_fused_kernel(x1_ref, x2_ref, upT_ref, cmask_ref, w1_ref, b1_ref,
                     w2_ref, b2_ref, o_ref, buf_ref, *, H1, W1, H2, W2, G):
    # x1_ref:   (1, C1, H1*W1)  f32   low-res input, flattened per channel
    # x2_ref:   (1, C2, S)      f32   skip connection, flattened
    # upT_ref:  (H1*W1, 4*H1*W1) bf16 bilinear 2x interp matrix (transposed)
    # cmask_ref:(2, S)          bf16  left/right edge-column masks
    # w{1,2}_ref:(9, Cout, Cin) bf16  folded conv+BN weights, tap-major
    # b{1,2}_ref:(Cout, 1)      f32   folded bias/BN shift
    # o_ref:    (1, Cout, S)          output block
    # buf_ref:  (nbuf, S + 2G)  bf16  zero-guard-banded flat image scratch
    C1 = x1_ref.shape[1]
    C2 = x2_ref.shape[1]
    Cin = C1 + C2
    Cmid = w1_ref.shape[1]
    S = H2 * W2
    H1u, W1u = 2 * H1, 2 * W1                       # upsampled x1 spatial size
    off_y, off_x = (H2 - H1u) // 2, (W2 - W1u) // 2  # F.pad placement offsets
    full_cover = (off_y == 0 and off_x == 0 and H1u == H2 and W1u == W2)
    nbuf = buf_ref.shape[0]
    bt = buf_ref.dtype

    # zero only the guard-band columns (lane-aligned); interior is overwritten
    buf_ref[:, 0:G] = jnp.zeros((nbuf, G), bt)
    buf_ref[:, G + S:2 * G + S] = jnp.zeros((nbuf, G), bt)

    # channel concat, part 1: skip connection x2 -> rows [0, C2)
    buf_ref[0:C2, G:G + S] = x2_ref[0].astype(bt)

    # channel concat, part 2: bilinear 2x upsample of x1 (align_corners=True)
    # as ONE whole-slab MXU matmul against the precomputed interpolation matrix.
    up = jnp.dot(x1_ref[0].astype(jnp.bfloat16), upT_ref[...],
                 preferred_element_type=jnp.float32)        # (C1, H1u*W1u) f32
    if full_cover:
        buf_ref[C2:Cin, G:G + S] = up.astype(bt)            # single aligned store
    else:
        # general F.pad case: zero the x1 rows, then place each upsampled row
        buf_ref[C2:Cin, G:G + S] = jnp.zeros((C1, S), bt)
        for p in range(H1u):
            lo = G + (p + off_y) * W2 + off_x
            buf_ref[C2:Cin, lo:lo + W1u] = up[:, p * W1u:(p + 1) * W1u].astype(bt)

    def conv3x3(n_ch, w_ref):
        """3x3 SAME conv of buf rows [0, n_ch) as 9 accumulating tap matmuls."""
        # hoist the edge-column mask broadcasts out of the tap loop
        mask_l = jnp.broadcast_to(cmask_ref[0:1, :], (n_ch, S))
        mask_r = jnp.broadcast_to(cmask_ref[1:2, :], (n_ch, S))
        acc = None
        k = 0
        for dy in (-1, 0, 1):
            for dx in (-1, 0, 1):
                start = G + dy * W2 + dx                    # static lane offset
                t = buf_ref[0:n_ch, start:start + S]        # bf16 tap slice
                if dx == -1:
                    t = t * mask_l                          # zero x==0 columns
                elif dx == 1:
                    t = t * mask_r                          # zero x==W2-1 cols
                p = jnp.dot(w_ref[k], t, preferred_element_type=jnp.float32)
                acc = p if acc is None else acc + p
                k += 1
        return acc                                           # (Cout, S) f32

    # conv1 (3x3 SAME) + folded bias/BN + ReLU; activation never leaves VMEM
    h = jnp.maximum(conv3x3(Cin, w1_ref) + b1_ref[...], 0.0)  # (Cmid, S)
    buf_ref[0:Cmid, G:G + S] = h.astype(bt)                   # aligned writeback

    # conv2 (3x3 SAME) + folded bias/BN + ReLU
    out = jnp.maximum(conv3x3(Cmid, w2_ref) + b2_ref[...], 0.0)
    o_ref[0] = out.astype(o_ref.dtype)                        # lane-dense store


# -------------------------------- wrappers ------------------------------------

def _interp_matrix(n_out, n_in):
    """1-D linear interpolation matrix (align_corners=True), shape (n_out, n_in)."""
    if n_in == 1:
        return jnp.ones((n_out, 1), jnp.float32)
    src = jnp.arange(n_out, dtype=jnp.float32) * (n_in - 1) / (n_out - 1)
    i0 = jnp.clip(jnp.floor(src).astype(jnp.int32), 0, n_in - 1)
    i1 = jnp.clip(i0 + 1, 0, n_in - 1)
    frac = src - i0.astype(jnp.float32)
    m = jnp.zeros((n_out, n_in), jnp.float32)
    m = m.at[jnp.arange(n_out), i0].add(1.0 - frac)
    m = m.at[jnp.arange(n_out), i1].add(frac)
    return m


def _fold_conv_bn(w_hwio, bias, gamma, beta, mean, var, eps=1e-5):
    """Fold conv bias + eval-mode BatchNorm into tap-major (9, Cout, Cin) bf16
    weights plus a (Cout, 1) f32 additive shift."""
    kh, kw, cin, cout = w_hwio.shape
    scale = gamma / jnp.sqrt(var + eps)                        # (Cout,)
    w = (w_hwio * scale).transpose(0, 1, 3, 2)                 # (kh, kw, Cout, Cin)
    w = w.reshape(kh * kw, cout, cin).astype(jnp.bfloat16)     # tap-major
    shift = (beta + (bias - mean) * scale).reshape(cout, 1).astype(jnp.float32)
    return w, shift


def up_forward(params, x1_nchw, x2_nchw):
    """Up.forward(x1, x2) with bilinear=True (BN eval mode). NCHW in / NCHW out.
    The whole block runs as a single fused Pallas kernel per batch element."""
    N, C1, H1, W1 = x1_nchw.shape
    N2, C2, H2, W2 = x2_nchw.shape
    assert N == N2
    S = H2 * W2
    Cin = C1 + C2

    w1, b1 = _fold_conv_bn(params["w1"], params["b1"], params["g1"],
                           params["beta1"], params["m1"], params["v1"])
    w2, b2 = _fold_conv_bn(params["w2"], params["b2"], params["g2"],
                           params["beta2"], params["m2"], params["v2"])
    Cmid, Cout = w1.shape[1], w2.shape[1]
    assert w1.shape[2] == Cin and w2.shape[2] == Cmid

    # Precomputed 2x bilinear (align_corners=True) interpolation matrix:
    # up_flat = x1_flat @ upT   with upT = kron(uh, uw).T, (H1*W1, 4*H1*W1).
    # TODO(synk): for large x1 spatial sizes switch to the separable two-matmul
    #             form inside an H-tiled kernel (this dense form is only meant
    #             for whole-image-in-VMEM feature maps).
    uh = _interp_matrix(2 * H1, H1)
    uw = _interp_matrix(2 * W1, W1)
    upT = jnp.kron(uh, uw).T.astype(jnp.bfloat16)              # (H1*W1, 4*H1*W1)

    # 0/1 edge-column masks for the dx=-1 / dx=+1 conv taps (flat layout)
    col = jnp.arange(S, dtype=jnp.int32) % W2
    cmask = jnp.stack([(col >= 1), (col <= W2 - 2)], axis=0).astype(jnp.bfloat16)

    # free reshapes only -- no activation transposes in the wrapper
    x1_flat = x1_nchw.reshape(N, C1, H1 * W1)
    x2_flat = x2_nchw.reshape(N, C2, S)

    G = -(-(W2 + 1) // 128) * 128            # lane-aligned guard band (>= W2+1)
    nbuf = max(Cin, Cmid)
    kernel = functools.partial(_up_fused_kernel, H1=H1, W1=W1, H2=H2, W2=W2, G=G)

    out_flat = pl.pallas_call(
        kernel,
        out_shape=jax.ShapeDtypeStruct((N, Cout, S), x1_nchw.dtype),
        grid=(N,),
        in_specs=[
            pl.BlockSpec((1, C1, H1 * W1), lambda n: (n, 0, 0)),
            pl.BlockSpec((1, C2, S), lambda n: (n, 0, 0)),
            pl.BlockSpec((H1 * W1, 4 * H1 * W1), lambda n: (0, 0)),
            pl.BlockSpec((2, S), lambda n: (0, 0)),
            pl.BlockSpec((9, Cmid, Cin), lambda n: (0, 0, 0)),
            pl.BlockSpec((Cmid, 1), lambda n: (0, 0)),
            pl.BlockSpec((9, Cout, Cmid), lambda n: (0, 0, 0)),
            pl.BlockSpec((Cout, 1), lambda n: (0, 0)),
        ],
        out_specs=pl.BlockSpec((1, Cout, S), lambda n: (n, 0, 0)),
        scratch_shapes=[
            pltpu.VMEM((nbuf, S + 2 * G), jnp.bfloat16),  # guard-banded image
        ],
        compiler_params=pltpu.CompilerParams(
            dimension_semantics=("parallel",),            # megacore / v7x 2 TCs
            vmem_limit_bytes=32 * 1024 * 1024),
    )(x1_flat, x2_flat, upT, cmask, w1, b1, w2, b2)

    return out_flat.reshape(N, Cout, H2, W2)


# ---------------------------- pure-JAX reference ------------------------------

def _ref_conv_bn_relu(x_nhwc, w, b, g, beta, mean, var, eps=1e-5):
    y = jax.lax.conv_general_dilated(
        x_nhwc, w, window_strides=(1, 1), padding="SAME",
        dimension_numbers=("NHWC", "HWIO", "NHWC")) + b
    y = (y - mean) / jnp.sqrt(var + eps) * g + beta
    return jnp.maximum(y, 0.0)


def _ref_forward(params, x1_nchw, x2_nchw):
    x1 = jnp.transpose(x1_nchw, (0, 2, 3, 1))
    x2 = jnp.transpose(x2_nchw, (0, 2, 3, 1))
    N, H, W, C = x1.shape
    uh = _interp_matrix(2 * H, H)
    uw = _interp_matrix(2 * W, W)
    x1 = jnp.einsum("ph,nhwc->npwc", uh, x1)
    x1 = jnp.einsum("qw,npwc->npqc", uw, x1)
    x = jnp.concatenate([x2, x1], axis=-1)
    y = _ref_conv_bn_relu(x, params["w1"], params["b1"], params["g1"],
                          params["beta1"], params["m1"], params["v1"])
    y = _ref_conv_bn_relu(y, params["w2"], params["b2"], params["g2"],
                          params["beta2"], params["m2"], params["v2"])
    return jnp.transpose(y, (0, 3, 1, 2))


# ----------------------------------- main --------------------------------------

if __name__ == "__main__":
    key = jax.random.PRNGKey(0)
    ks = jax.random.split(key, 16)

    # Up(in_channels=8, out_channels=4, bilinear=True)
    in_channels, out_channels = 8, 4
    mid_channels = in_channels // 2          # DoubleConv mid = in_channels // 2
    N = 2
    H1 = W1 = 8                              # x1 spatial (lower resolution)
    H2s = W2s = 16                           # x2 spatial (skip connection)

    # x1 and x2 each carry in_channels//2 channels (standard UNet bilinear path)
    x1 = jax.random.normal(ks[0], (N, in_channels // 2, H1, W1), jnp.float32)
    x2 = jax.random.normal(ks[1], (N, in_channels // 2, H2s, W2s), jnp.float32)

    params = {
        # conv1: in_channels -> mid_channels (HWIO weights)
        "w1":    0.1 * jax.random.normal(ks[2], (3, 3, in_channels, mid_channels), jnp.float32),
        "b1":    0.1 * jax.random.normal(ks[3], (mid_channels,), jnp.float32),
        "g1":    1.0 + 0.1 * jax.random.normal(ks[4], (mid_channels,), jnp.float32),
        "beta1": 0.1 * jax.random.normal(ks[5], (mid_channels,), jnp.float32),
        "m1":    0.1 * jax.random.normal(ks[6], (mid_channels,), jnp.float32),
        "v1":    1.0 + 0.1 * jnp.abs(jax.random.normal(ks[7], (mid_channels,), jnp.float32)),
        # conv2: mid_channels -> out_channels
        "w2":    0.1 * jax.random.normal(ks[8], (3, 3, mid_channels, out_channels), jnp.float32),
        "b2":    0.1 * jax.random.normal(ks[9], (out_channels,), jnp.float32),
        "g2":    1.0 + 0.1 * jax.random.normal(ks[10], (out_channels,), jnp.float32),
        "beta2": 0.1 * jax.random.normal(ks[11], (out_channels,), jnp.float32),
        "m2":    0.1 * jax.random.normal(ks[12], (out_channels,), jnp.float32),
        "v2":    1.0 + 0.1 * jnp.abs(jax.random.normal(ks[13], (out_channels,), jnp.float32)),
    }

    out = jax.jit(up_forward)(params, x1, x2)
    out = jax.block_until_ready(out)

    ref = _ref_forward(params, x1, x2)
    assert out.shape == (N, out_channels, H2s, W2s), out.shape
    # bf16 MXU operands (per perf review) -> loosen the previous f32 2e-4 parity
    err = float(jnp.max(jnp.abs(out - ref)))
    assert err < 1e-1, err

    print("KERNEL_OK")
</pallas_src>

<mosaic_0001>
module attributes {stable_mosaic.version = 11 : i64} {
  func.func private @main(%arg0: i32) attributes {dimension_semantics = [#tpu.dimension_semantics<core_parallel>], iteration_bounds = array<i64: 2>, tpu.core_type = #tpu.core_type<sc_scalar_subcore>, window_params = []} {
    return
  }
}

module attributes {stable_mosaic.version = 11 : i64} {
  func.func private @main(%arg0: i32) attributes {dimension_semantics = [#tpu.dimension_semantics<core_parallel>], iteration_bounds = array<i64: 2>, tpu.core_type = #tpu.core_type<sc_scalar_subcore>, window_params = []} {
    return
  }
}

module attributes {stable_mosaic.version = 11 : i64} {
  func.func @_up_fused_kernel(%arg0: i32, %arg1: memref<1x4x64xf32, #tpu.memory_space<vmem>>, %arg2: memref<1x4x256xf32, #tpu.memory_space<vmem>>, %arg3: memref<64x256xbf16, #tpu.memory_space<vmem>>, %arg4: memref<2x256xbf16, #tpu.memory_space<vmem>>, %arg5: memref<9x4x8xbf16, #tpu.memory_space<vmem>>, %arg6: memref<4x1xf32, #tpu.memory_space<vmem>>, %arg7: memref<9x4x4xbf16, #tpu.memory_space<vmem>>, %arg8: memref<4x1xf32, #tpu.memory_space<vmem>>, %arg9: memref<1x4x256xf32, #tpu.memory_space<vmem>>, %arg10: memref<8x512xbf16, #tpu.memory_space<vmem>>) attributes {dimension_semantics = [#tpu.dimension_semantics<parallel>], iteration_bounds = array<i64: 2>, scalar_prefetch = 0 : i64, scratch_operands = 1 : i64, tpu.core_type = #tpu.core_type<tc>, window_params = [{transform_indices = @transform_0, window_bounds = array<i64: 1, 4, 64>}, {transform_indices = @transform_1, window_bounds = array<i64: 1, 4, 256>}, {pipeline_mode = #tpu.pipeline_mode<synchronous>, transform_indices = @transform_2, window_bounds = array<i64: 64, 256>}, {pipeline_mode = #tpu.pipeline_mode<synchronous>, transform_indices = @transform_3, window_bounds = array<i64: 2, 256>}, {pipeline_mode = #tpu.pipeline_mode<synchronous>, transform_indices = @transform_4, window_bounds = array<i64: 9, 4, 8>}, {pipeline_mode = #tpu.pipeline_mode<synchronous>, transform_indices = @transform_5, window_bounds = array<i64: 4, 1>}, {pipeline_mode = #tpu.pipeline_mode<synchronous>, transform_indices = @transform_6, window_bounds = array<i64: 9, 4, 4>}, {pipeline_mode = #tpu.pipeline_mode<synchronous>, transform_indices = @transform_7, window_bounds = array<i64: 4, 1>}, {transform_indices = @transform_8, window_bounds = array<i64: 1, 4, 256>}]} {
    %cst = arith.constant 0.000000e+00 : bf16
    %0 = vector.broadcast %cst : bf16 to vector<8x128xbf16>
    %c0 = arith.constant 0 : index
    %c0_0 = arith.constant 0 : index
    %1 = vector.load %arg10[%c0, %c0_0] : memref<8x512xbf16, #tpu.memory_space<vmem>>, vector<8x128xbf16>
    tpu.vector_store %arg10[%c0, %c0_0], %0 {strides = array<i32>} : memref<8x512xbf16, #tpu.memory_space<vmem>>, vector<8x128xbf16>,
    %cst_1 = arith.constant 0.000000e+00 : bf16
    %2 = vector.broadcast %cst_1 : bf16 to vector<8x128xbf16>
    %c0_2 = arith.constant 0 : index
    %c384 = arith.constant 384 : index
    %3 = vector.load %arg10[%c0_2, %c384] : memref<8x512xbf16, #tpu.memory_space<vmem>>, vector<8x128xbf16>
    tpu.vector_store %arg10[%c0_2, %c384], %2 {strides = array<i32>} : memref<8x512xbf16, #tpu.memory_space<vmem>>, vector<8x128xbf16>,
    %c0_3 = arith.constant 0 : index
    %c0_4 = arith.constant 0 : index
    %c0_5 = arith.constant 0 : index
    %4 = vector.load %arg2[%c0_3, %c0_4, %c0_5] : memref<1x4x256xf32, #tpu.memory_space<vmem>>, vector<1x4x256xf32>
    %5 = vector.shape_cast %4 : vector<1x4x256xf32> to vector<4x256xf32>
    %6 = arith.truncf %5 : vector<4x256xf32> to vector<4x256xbf16>
    %c0_6 = arith.constant 0 : index
    %c128 = arith.constant 128 : index
    %7 = vector.load %arg10[%c0_6, %c128] : memref<8x512xbf16, #tpu.memory_space<vmem>>, vector<4x256xbf16>
    tpu.vector_store %arg10[%c0_6, %c128], %6 {strides = array<i32>} : memref<8x512xbf16, #tpu.memory_space<vmem>>, vector<4x256xbf16>,
    %c0_7 = arith.constant 0 : index
    %c0_8 = arith.constant 0 : index
    %c0_9 = arith.constant 0 : index
    %8 = vector.load %arg1[%c0_7, %c0_8, %c0_9] : memref<1x4x64xf32, #tpu.memory_space<vmem>>, vector<1x4x64xf32>
    %9 = vector.shape_cast %8 : vector<1x4x64xf32> to vector<4x64xf32>
    %10 = arith.truncf %9 : vector<4x64xf32> to vector<4x64xbf16>
    %c0_10 = arith.constant 0 : index
    %c0_11 = arith.constant 0 : index
    %11 = vector.load %arg3[%c0_10, %c0_11] : memref<64x256xbf16, #tpu.memory_space<vmem>>, vector<64x256xbf16>
    %cst_12 = arith.constant dense<0.000000e+00> : vector<4x256xf32>
    %12 = tpu.matmul %10, %11, %cst_12 {dimension_numbers = #tpu.dot_dimension_numbers<[1], [0], [0], [1], [0, 0, 1, 1], [], []>} : vector<4x64xbf16>, vector<64x256xbf16>, vector<4x256xf32> -> vector<4x256xf32>
    %13 = arith.truncf %12 : vector<4x256xf32> to vector<4x256xbf16>
    %c4 = arith.constant 4 : index
    %c128_13 = arith.constant 128 : index
    %14 = vector.load %arg10[%c4, %c128_13] : memref<8x512xbf16, #tpu.memory_space<vmem>>, vector<4x256xbf16>
    tpu.vector_store %arg10[%c4, %c128_13], %13 {strides = array<i32>} : memref<8x512xbf16, #tpu.memory_space<vmem>>, vector<4x256xbf16>,
    %c0_14 = arith.constant 0 : index
    %c0_15 = arith.constant 0 : index
    %15 = vector.load %arg4[%c0_14, %c0_15] : memref<2x256xbf16, #tpu.memory_space<vmem>>, vector<1x256xbf16>
    %16 = vector.shape_cast %15 : vector<1x256xbf16> to vector<1x256xbf16>
    %17 = vector.broadcast %16 : vector<1x256xbf16> to vector<8x256xbf16>
    %c1 = arith.constant 1 : index
    %c0_16 = arith.constant 0 : index
    %18 = vector.load %arg4[%c1, %c0_16] : memref<2x256xbf16, #tpu.memory_space<vmem>>, vector<1x256xbf16>
    %19 = vector.shape_cast %18 : vector<1x256xbf16> to vector<1x256xbf16>
    %20 = vector.broadcast %19 : vector<1x256xbf16> to vector<8x256xbf16>
    %c0_17 = arith.constant 0 : index
    %c111 = arith.constant 111 : index
    %21 = vector.load %arg10[%c0_17, %c111] : memref<8x512xbf16, #tpu.memory_space<vmem>>, vector<8x256xbf16>
    %22 = arith.mulf %21, %17 : vector<8x256xbf16>
    %c0_18 = arith.constant 0 : index
    %c0_19 = arith.constant 0 : index
    %c0_20 = arith.constant 0 : index
    %23 = vector.load %arg5[%c0_18, %c0_19, %c0_20] : memref<9x4x8xbf16, #tpu.memory_space<vmem>>, vector<1x4x8xbf16>
    %24 = vector.shape_cast %23 : vector<1x4x8xbf16> to vector<4x8xbf16>
    %cst_21 = arith.constant dense<0.000000e+00> : vector<4x256xf32>
    %25 = tpu.matmul %24, %22, %cst_21 {dimension_numbers = #tpu.dot_dimension_numbers<[1], [0], [0], [1], [0, 0, 1, 1], [], []>} : vector<4x8xbf16>, vector<8x256xbf16>, vector<4x256xf32> -> vector<4x256xf32>
    %c0_22 = arith.constant 0 : index
    %c112 = arith.constant 112 : index
    %26 = vector.load %arg10[%c0_22, %c112] : memref<8x512xbf16, #tpu.memory_space<vmem>>, vector<8x256xbf16>
    %c1_23 = arith.constant 1 : index
    %c0_24 = arith.constant 0 : index
    %c0_25 = arith.constant 0 : index
    %27 = vector.load %arg5[%c1_23, %c0_24, %c0_25] : memref<9x4x8xbf16, #tpu.memory_space<vmem>>, vector<1x4x8xbf16>
    %28 = vector.shape_cast %27 : vector<1x4x8xbf16> to vector<4x8xbf16>
    %cst_26 = arith.constant dense<0.000000e+00> : vector<4x256xf32>
    %29 = tpu.matmul %28, %26, %cst_26 {dimension_numbers = #tpu.dot_dimension_numbers<[1], [0], [0], [1], [0, 0, 1, 1], [], []>} : vector<4x8xbf16>, vector<8x256xbf16>, vector<4x256xf32> -> vector<4x256xf32>
    %30 = arith.addf %25, %29 : vector<4x256xf32>
    %c0_27 = arith.constant 0 : index
    %c113 = arith.constant 113 : index
    %31 = vector.load %arg10[%c0_27, %c113] : memref<8x512xbf16, #tpu.memory_space<vmem>>, vector<8x256xbf16>
    %32 = arith.mulf %31, %20 : vector<8x256xbf16>
    %c2 = arith.constant 2 : index
    %c0_28 = arith.constant 0 : index
    %c0_29 = arith.constant 0 : index
    %33 = vector.load %arg5[%c2, %c0_28, %c0_29] : memref<9x4x8xbf16, #tpu.memory_space<vmem>>, vector<1x4x8xbf16>
    %34 = vector.shape_cast %33 : vector<1x4x8xbf16> to vector<4x8xbf16>
    %cst_30 = arith.constant dense<0.000000e+00> : vector<4x256xf32>
    %35 = tpu.matmul %34, %32, %cst_30 {dimension_numbers = #tpu.dot_dimension_numbers<[1], [0], [0], [1], [0, 0, 1, 1], [], []>} : vector<4x8xbf16>, vector<8x256xbf16>, vector<4x256xf32> -> vector<4x256xf32>
    %36 = arith.addf %30, %35 : vector<4x256xf32>
    %c0_31 = arith.constant 0 : index
    %c127 = arith.constant 127 : index
    %37 = vector.load %arg10[%c0_31, %c127] : memref<8x512xbf16, #tpu.memory_space<vmem>>, vector<8x256xbf16>
    %38 = arith.mulf %37, %17 : vector<8x256xbf16>
    %c3 = arith.constant 3 : index
    %c0_32 = arith.constant 0 : index
    %c0_33 = arith.constant 0 : index
    %39 = vector.load %arg5[%c3, %c0_32, %c0_33] : memref<9x4x8xbf16, #tpu.memory_space<vmem>>, vector<1x4x8xbf16>
    %40 = vector.shape_cast %39 : vector<1x4x8xbf16> to vector<4x8xbf16>
    %cst_34 = arith.constant dense<0.000000e+00> : vector<4x256xf32>
    %41 = tpu.matmul %40, %38, %cst_34 {dimension_numbers = #tpu.dot_dimension_numbers<[1], [0], [0], [1], [0, 0, 1, 1], [], []>} : vector<4x8xbf16>, vector<8x256xbf16>, vector<4x256xf32> -> vector<4x256xf32>
    %42 = arith.addf %36, %41 : vector<4x256xf32>
    %c0_35 = arith.constant 0 : index
    %c128_36 = arith.constant 128 : index
    %43 = vector.load %arg10[%c0_35, %c128_36] : memref<8x512xbf16, #tpu.memory_space<vmem>>, vector<8x256xbf16>
    %c4_37 = arith.constant 4 : index
    %c0_38 = arith.constant 0 : index
    %c0_39 = arith.constant 0 : index
    %44 = vector.load %arg5[%c4_37, %c0_38, %c0_39] : memref<9x4x8xbf16, #tpu.memory_space<vmem>>, vector<1x4x8xbf16>
    %45 = vector.shape_cast %44 : vector<1x4x8xbf16> to vector<4x8xbf16>
    %cst_40 = arith.constant dense<0.000000e+00> : vector<4x256xf32>
    %46 = tpu.matmul %45, %43, %cst_40 {dimension_numbers = #tpu.dot_dimension_numbers<[1], [0], [0], [1], [0, 0, 1, 1], [], []>} : vector<4x8xbf16>, vector<8x256xbf16>, vector<4x256xf32> -> vector<4x256xf32>
    %47 = arith.addf %42, %46 : vector<4x256xf32>
    %c0_41 = arith.constant 0 : index
    %c129 = arith.constant 129 : index
    %48 = vector.load %arg10[%c0_41, %c129] : memref<8x512xbf16, #tpu.memory_space<vmem>>, vector<8x256xbf16>
    %49 = arith.mulf %48, %20 : vector<8x256xbf16>
    %c5 = arith.constant 5 : index
    %c0_42 = arith.constant 0 : index
    %c0_43 = arith.constant 0 : index
    %50 = vector.load %arg5[%c5, %c0_42, %c0_43] : memref<9x4x8xbf16, #tpu.memory_space<vmem>>, vector<1x4x8xbf16>
    %51 = vector.shape_cast %50 : vector<1x4x8xbf16> to vector<4x8xbf16>
    %cst_44 = arith.constant dense<0.000000e+00> : vector<4x256xf32>
    %52 = tpu.matmul %51, %49, %cst_44 {dimension_numbers = #tpu.dot_dimension_numbers<[1], [0], [0], [1], [0, 0, 1, 1], [], []>} : vector<4x8xbf16>, vector<8x256xbf16>, vector<4x256xf32> -> vector<4x256xf32>
    %53 = arith.addf %47, %52 : vector<4x256xf32>
    %c0_45 = arith.constant 0 : index
    %c143 = arith.constant 143 : index
    %54 = vector.load %arg10[%c0_45, %c143] : memref<8x512xbf16, #tpu.memory_space<vmem>>, vector<8x256xbf16>
    %55 = arith.mulf %54, %17 : vector<8x256xbf16>
    %c6 = arith.constant 6 : index
    %c0_46 = arith.constant 0 : index
    %c0_47 = arith.constant 0 : index
    %56 = vector.load %arg5[%c6, %c0_46, %c0_47] : memref<9x4x8xbf16, #tpu.memory_space<vmem>>, vector<1x4x8xbf16>
    %57 = vector.shape_cast %56 : vector<1x4x8xbf16> to vector<4x8xbf16>
    %cst_48 = arith.constant dense<0.000000e+00> : vector<4x256xf32>
    %58 = tpu.matmul %57, %55, %cst_48 {dimension_numbers = #tpu.dot_dimension_numbers<[1], [0], [0], [1], [0, 0, 1, 1], [], []>} : vector<4x8xbf16>, vector<8x256xbf16>, vector<4x256xf32> -> vector<4x256xf32>
    %59 = arith.addf %53, %58 : vector<4x256xf32>
    %c0_49 = arith.constant 0 : index
    %c144 = arith.constant 144 : index
    %60 = vector.load %arg10[%c0_49, %c144] : memref<8x512xbf16, #tpu.memory_space<vmem>>, vector<8x256xbf16>
    %c7 = arith.constant 7 : index
    %c0_50 = arith.constant 0 : index
    %c0_51 = arith.constant 0 : index
    %61 = vector.load %arg5[%c7, %c0_50, %c0_51] : memref<9x4x8xbf16, #tpu.memory_space<vmem>>, vector<1x4x8xbf16>
    %62 = vector.shape_cast %61 : vector<1x4x8xbf16> to vector<4x8xbf16>
    %cst_52 = arith.constant dense<0.000000e+00> : vector<4x256xf32>
    %63 = tpu.matmul %62, %60, %cst_52 {dimension_numbers = #tpu.dot_dimension_numbers<[1], [0], [0], [1], [0, 0, 1, 1], [], []>} : vector<4x8xbf16>, vector<8x256xbf16>, vector<4x256xf32> -> vector<4x256xf32>
    %64 = arith.addf %59, %63 : vector<4x256xf32>
    %c0_53 = arith.constant 0 : index
    %c145 = arith.constant 145 : index
    %65 = vector.load %arg10[%c0_53, %c145] : memref<8x512xbf16, #tpu.memory_space<vmem>>, vector<8x256xbf16>
    %66 = arith.mulf %65, %20 : vector<8x256xbf16>
    %c8 = arith.constant 8 : index
    %c0_54 = arith.constant 0 : index
    %c0_55 = arith.constant 0 : index
    %67 = vector.load %arg5[%c8, %c0_54, %c0_55] : memref<9x4x8xbf16, #tpu.memory_space<vmem>>, vector<1x4x8xbf16>
    %68 = vector.shape_cast %67 : vector<1x4x8xbf16> to vector<4x8xbf16>
    %cst_56 = arith.constant dense<0.000000e+00> : vector<4x256xf32>
    %69 = tpu.matmul %68, %66, %cst_56 {dimension_numbers = #tpu.dot_dimension_numbers<[1], [0], [0], [1], [0, 0, 1, 1], [], []>} : vector<4x8xbf16>, vector<8x256xbf16>, vector<4x256xf32> -> vector<4x256xf32>
    %70 = arith.addf %64, %69 : vector<4x256xf32>
    %c0_57 = arith.constant 0 : index
    %c0_58 = arith.constant 0 : index
    %71 = vector.load %arg6[%c0_57, %c0_58] : memref<4x1xf32, #tpu.memory_space<vmem>>, vector<4x1xf32>
    %72 = vector.broadcast %71 : vector<4x1xf32> to vector<4x256xf32>
    %73 = arith.addf %70, %72 : vector<4x256xf32>
    %cst_59 = arith.constant 0.000000e+00 : f32
    %74 = vector.broadcast %cst_59 : f32 to vector<4x256xf32>
    %75 = arith.maximumf %73, %74 : vector<4x256xf32>
    %76 = arith.truncf %75 : vector<4x256xf32> to vector<4x256xbf16>
    %c0_60 = arith.constant 0 : index
    %c128_61 = arith.constant 128 : index
    %77 = vector.load %arg10[%c0_60, %c128_61] : memref<8x512xbf16, #tpu.memory_space<vmem>>, vector<4x256xbf16>
    tpu.vector_store %arg10[%c0_60, %c128_61], %76 {strides = array<i32>} : memref<8x512xbf16, #tpu.memory_space<vmem>>, vector<4x256xbf16>,
    %c0_62 = arith.constant 0 : index
    %c0_63 = arith.constant 0 : index
    %78 = vector.load %arg4[%c0_62, %c0_63] : memref<2x256xbf16, #tpu.memory_space<vmem>>, vector<1x256xbf16>
    %79 = vector.shape_cast %78 : vector<1x256xbf16> to vector<1x256xbf16>
    %80 = vector.broadcast %79 : vector<1x256xbf16> to vector<4x256xbf16>
    %c1_64 = arith.constant 1 : index
    %c0_65 = arith.constant 0 : index
    %81 = vector.load %arg4[%c1_64, %c0_65] : memref<2x256xbf16, #tpu.memory_space<vmem>>, vector<1x256xbf16>
    %82 = vector.shape_cast %81 : vector<1x256xbf16> to vector<1x256xbf16>
    %83 = vector.broadcast %82 : vector<1x256xbf16> to vector<4x256xbf16>
    %c0_66 = arith.constant 0 : index
    %c111_67 = arith.constant 111 : index
    %84 = vector.load %arg10[%c0_66, %c111_67] : memref<8x512xbf16, #tpu.memory_space<vmem>>, vector<4x256xbf16>
    %85 = arith.mulf %84, %80 : vector<4x256xbf16>
    %c0_68 = arith.constant 0 : index
    %c0_69 = arith.constant 0 : index
    %c0_70 = arith.constant 0 : index
    %86 = vector.load %arg7[%c0_68, %c0_69, %c0_70] : memref<9x4x4xbf16, #tpu.memory_space<vmem>>, vector<1x4x4xbf16>
    %87 = vector.shape_cast %86 : vector<1x4x4xbf16> to vector<4x4xbf16>
    %cst_71 = arith.constant dense<0.000000e+00> : vector<4x256xf32>
    %88 = tpu.matmul %87, %85, %cst_71 {dimension_numbers = #tpu.dot_dimension_numbers<[1], [0], [0], [1], [0, 0, 1, 1], [], []>} : vector<4x4xbf16>, vector<4x256xbf16>, vector<4x256xf32> -> vector<4x256xf32>
    %c0_72 = arith.constant 0 : index
    %c112_73 = arith.constant 112 : index
    %89 = vector.load %arg10[%c0_72, %c112_73] : memref<8x512xbf16, #tpu.memory_space<vmem>>, vector<4x256xbf16>
    %c1_74 = arith.constant 1 : index
    %c0_75 = arith.constant 0 : index
    %c0_76 = arith.constant 0 : index
    %90 = vector.load %arg7[%c1_74, %c0_75, %c0_76] : memref<9x4x4xbf16, #tpu.memory_space<vmem>>, vector<1x4x4xbf16>
    %91 = vector.shape_cast %90 : vector<1x4x4xbf16> to vector<4x4xbf16>
    %cst_77 = arith.constant dense<0.000000e+00> : vector<4x256xf32>
    %92 = tpu.matmul %91, %89, %cst_77 {dimension_numbers = #tpu.dot_dimension_numbers<[1], [0], [0], [1], [0, 0, 1, 1], [], []>} : vector<4x4xbf16>, vector<4x256xbf16>, vector<4x256xf32> -> vector<4x256xf32>
    %93 = arith.addf %88, %92 : vector<4x256xf32>
    %c0_78 = arith.constant 0 : index
    %c113_79 = arith.constant 113 : index
    %94 = vector.load %arg10[%c0_78, %c113_79] : memref<8x512xbf16, #tpu.memory_space<vmem>>, vector<4x256xbf16>
    %95 = arith.mulf %94, %83 : vector<4x256xbf16>
    %c2_80 = arith.constant 2 : index
    %c0_81 = arith.constant 0 : index
    %c0_82 = arith.constant 0 : index
    %96 = vector.load %arg7[%c2_80, %c0_81, %c0_82] : memref<9x4x4xbf16, #tpu.memory_space<vmem>>, vector<1x4x4xbf16>
    %97 = vector.shape_cast %96 : vector<1x4x4xbf16> to vector<4x4xbf16>
    %cst_83 = arith.constant dense<0.000000e+00> : vector<4x256xf32>
    %98 = tpu.matmul %97, %95, %cst_83 {dimension_numbers = #tpu.dot_dimension_numbers<[1], [0], [0], [1], [0, 0, 1, 1], [], []>} : vector<4x4xbf16>, vector<4x256xbf16>, vector<4x256xf32> -> vector<4x256xf32>
    %99 = arith.addf %93, %98 : vector<4x256xf32>
    %c0_84 = arith.constant 0 : index
    %c127_85 = arith.constant 127 : index
    %100 = vector.load %arg10[%c0_84, %c127_85] : memref<8x512xbf16, #tpu.memory_space<vmem>>, vector<4x256xbf16>
    %101 = arith.mulf %100, %80 : vector<4x256xbf16>
    %c3_86 = arith.constant 3 : index
    %c0_87 = arith.constant 0 : index
    %c0_88 = arith.constant 0 : index
    %102 = vector.load %arg7[%c3_86, %c0_87, %c0_88] : memref<9x4x4xbf16, #tpu.memory_space<vmem>>, vector<1x4x4xbf16>
    %103 = vector.shape_cast %102 : vector<1x4x4xbf16> to vector<4x4xbf16>
    %cst_89 = arith.constant dense<0.000000e+00> : vector<4x256xf32>
    %104 = tpu.matmul %103, %101, %cst_89 {dimension_numbers = #tpu.dot_dimension_numbers<[1], [0], [0], [1], [0, 0, 1, 1], [], []>} : vector<4x4xbf16>, vector<4x256xbf16>, vector<4x256xf32> -> vector<4x256xf32>
    %105 = arith.addf %99, %104 : vector<4x256xf32>
    %c0_90 = arith.constant 0 : index
    %c128_91 = arith.constant 128 : index
    %106 = vector.load %arg10[%c0_90, %c128_91] : memref<8x512xbf16, #tpu.memory_space<vmem>>, vector<4x256xbf16>
    %c4_92 = arith.constant 4 : index
    %c0_93 = arith.constant 0 : index
    %c0_94 = arith.constant 0 : index
    %107 = vector.load %arg7[%c4_92, %c0_93, %c0_94] : memref<9x4x4xbf16, #tpu.memory_space<vmem>>, vector<1x4x4xbf16>
    %108 = vector.shape_cast %107 : vector<1x4x4xbf16> to vector<4x4xbf16>
    %cst_95 = arith.constant dense<0.000000e+00> : vector<4x256xf32>
    %109 = tpu.matmul %108, %106, %cst_95 {dimension_numbers = #tpu.dot_dimension_numbers<[1], [0], [0], [1], [0, 0, 1, 1], [], []>} : vector<4x4xbf16>, vector<4x256xbf16>, vector<4x256xf32> -> vector<4x256xf32>
    %110 = arith.addf %105, %109 : vector<4x256xf32>
    %c0_96 = arith.constant 0 : index
    %c129_97 = arith.constant 129 : index
    %111 = vector.load %arg10[%c0_96, %c129_97] : memref<8x512xbf16, #tpu.memory_space<vmem>>, vector<4x256xbf16>
    %112 = arith.mulf %111, %83 : vector<4x256xbf16>
    %c5_98 = arith.constant 5 : index
    %c0_99 = arith.constant 0 : index
    %c0_100 = arith.constant 0 : index
    %113 = vector.load %arg7[%c5_98, %c0_99, %c0_100] : memref<9x4x4xbf16, #tpu.memory_space<vmem>>, vector<1x4x4xbf16>
    %114 = vector.shape_cast %113 : vector<1x4x4xbf16> to vector<4x4xbf16>
    %cst_101 = arith.constant dense<0.000000e+00> : vector<4x256xf32>
    %115 = tpu.matmul %114, %112, %cst_101 {dimension_numbers = #tpu.dot_dimension_numbers<[1], [0], [0], [1], [0, 0, 1, 1], [], []>} : vector<4x4xbf16>, vector<4x256xbf16>, vector<4x256xf32> -> vector<4x256xf32>
    %116 = arith.addf %110, %115 : vector<4x256xf32>
    %c0_102 = arith.constant 0 : index
    %c143_103 = arith.constant 143 : index
    %117 = vector.load %arg10[%c0_102, %c143_103] : memref<8x512xbf16, #tpu.memory_space<vmem>>, vector<4x256xbf16>
    %118 = arith.mulf %117, %80 : vector<4x256xbf16>
    %c6_104 = arith.constant 6 : index
    %c0_105 = arith.constant 0 : index
    %c0_106 = arith.constant 0 : index
    %119 = vector.load %arg7[%c6_104, %c0_105, %c0_106] : memref<9x4x4xbf16, #tpu.memory_space<vmem>>, vector<1x4x4xbf16>
    %120 = vector.shape_cast %119 : vector<1x4x4xbf16> to vector<4x4xbf16>
    %cst_107 = arith.constant dense<0.000000e+00> : vector<4x256xf32>
    %121 = tpu.matmul %120, %118, %cst_107 {dimension_numbers = #tpu.dot_dimension_numbers<[1], [0], [0], [1], [0, 0, 1, 1], [], []>} : vector<4x4xbf16>, vector<4x256xbf16>, vector<4x256xf32> -> vector<4x256xf32>
    %122 = arith.addf %116, %121 : vector<4x256xf32>
    %c0_108 = arith.constant 0 : index
    %c144_109 = arith.constant 144 : index
    %123 = vector.load %arg10[%c0_108, %c144_109] : memref<8x512xbf16, #tpu.memory_space<vmem>>, vector<4x256xbf16>
    %c7_110 = arith.constant 7 : index
    %c0_111 = arith.constant 0 : index
    %c0_112 = arith.constant 0 : index
    %124 = vector.load %arg7[%c7_110, %c0_111, %c0_112] : memref<9x4x4xbf16, #tpu.memory_space<vmem>>, vector<1x4x4xbf16>
    %125 = vector.shape_cast %124 : vector<1x4x4xbf16> to vector<4x4xbf16>
    %cst_113 = arith.constant dense<0.000000e+00> : vector<4x256xf32>
    %126 = tpu.matmul %125, %123, %cst_113 {dimension_numbers = #tpu.dot_dimension_numbers<[1], [0], [0], [1], [0, 0, 1, 1], [], []>} : vector<4x4xbf16>, vector<4x256xbf16>, vector<4x256xf32> -> vector<4x256xf32>
    %127 = arith.addf %122, %126 : vector<4x256xf32>
    %c0_114 = arith.constant 0 : index
    %c145_115 = arith.constant 145 : index
    %128 = vector.load %arg10[%c0_114, %c145_115] : memref<8x512xbf16, #tpu.memory_space<vmem>>, vector<4x256xbf16>
    %129 = arith.mulf %128, %83 : vector<4x256xbf16>
    %c8_116 = arith.constant 8 : index
    %c0_117 = arith.constant 0 : index
    %c0_118 = arith.constant 0 : index
    %130 = vector.load %arg7[%c8_116, %c0_117, %c0_118] : memref<9x4x4xbf16, #tpu.memory_space<vmem>>, vector<1x4x4xbf16>
    %131 = vector.shape_cast %130 : vector<1x4x4xbf16> to vector<4x4xbf16>
    %cst_119 = arith.constant dense<0.000000e+00> : vector<4x256xf32>
    %132 = tpu.matmul %131, %129, %cst_119 {dimension_numbers = #tpu.dot_dimension_numbers<[1], [0], [0], [1], [0, 0, 1, 1], [], []>} : vector<4x4xbf16>, vector<4x256xbf16>, vector<4x256xf32> -> vector<4x256xf32>
    %133 = arith.addf %127, %132 : vector<4x256xf32>
    %c0_120 = arith.constant 0 : index
    %c0_121 = arith.constant 0 : index
    %134 = vector.load %arg8[%c0_120, %c0_121] : memref<4x1xf32, #tpu.memory_space<vmem>>, vector<4x1xf32>
    %135 = vector.broadcast %134 : vector<4x1xf32> to vector<4x256xf32>
    %136 = arith.addf %133, %135 : vector<4x256xf32>
    %cst_122 = arith.constant 0.000000e+00 : f32
    %137 = vector.broadcast %cst_122 : f32 to vector<4x256xf32>
    %138 = arith.maximumf %136, %137 : vector<4x256xf32>
    %c0_123 = arith.constant 0 : index
    %c0_124 = arith.constant 0 : index
    %c0_125 = arith.constant 0 : index
    %139 = vector.load %arg9[%c0_123, %c0_124, %c0_125] : memref<1x4x256xf32, #tpu.memory_space<vmem>>, vector<1x4x256xf32>
    %140 = vector.shape_cast %139 : vector<1x4x256xf32> to vector<4x256xf32>
    %141 = vector.shape_cast %138 : vector<4x256xf32> to vector<1x4x256xf32>
    tpu.vector_store %arg9[%c0_123, %c0_124, %c0_125], %141 {strides = array<i32>} : memref<1x4x256xf32, #tpu.memory_space<vmem>>, vector<1x4x256xf32>,
    return
  }
  func.func @transform_0(%arg0: i32) -> (i32, i32, i32) {
    %c0_i32 = arith.constant 0 : i32
    %c0_i32_0 = arith.constant 0 : i32
    %c0_i32_1 = arith.constant 0 : i32
    return %arg0, %c0_i32, %c0_i32_0 : i32, i32, i32
  }
  func.func @transform_1(%arg0: i32) -> (i32, i32, i32) {
    %c0_i32 = arith.constant 0 : i32
    %c0_i32_0 = arith.constant 0 : i32
    %c0_i32_1 = arith.constant 0 : i32
    return %arg0, %c0_i32, %c0_i32_0 : i32, i32, i32
  }
  func.func @transform_2(%arg0: i32) -> (i32, i32) {
    %c0_i32 = arith.constant 0 : i32
    %c0_i32_0 = arith.constant 0 : i32
    %c0_i32_1 = arith.constant 0 : i32
    return %c0_i32, %c0_i32_0 : i32, i32
  }
  func.func @transform_3(%arg0: i32) -> (i32, i32) {
    %c0_i32 = arith.constant 0 : i32
    %c0_i32_0 = arith.constant 0 : i32
    %c0_i32_1 = arith.constant 0 : i32
    return %c0_i32, %c0_i32_0 : i32, i32
  }
  func.func @transform_4(%arg0: i32) -> (i32, i32, i32) {
    %c0_i32 = arith.constant 0 : i32
    %c0_i32_0 = arith.constant 0 : i32
    %c0_i32_1 = arith.constant 0 : i32
    %c0_i32_2 = arith.constant 0 : i32
    return %c0_i32, %c0_i32_0, %c0_i32_1 : i32, i32, i32
  }
  func.func @transform_5(%arg0: i32) -> (i32, i32) {
    %c0_i32 = arith.constant 0 : i32
    %c0_i32_0 = arith.constant 0 : i32
    %c0_i32_1 = arith.constant 0 : i32
    return %c0_i32, %c0_i32_0 : i32, i32
  }
  func.func @transform_6(%arg0: i32) -> (i32, i32, i32) {
    %c0_i32 = arith.constant 0 : i32
    %c0_i32_0 = arith.constant 0 : i32
    %c0_i32_1 = arith.constant 0 : i32
    %c0_i32_2 = arith.constant 0 : i32
    return %c0_i32, %c0_i32_0, %c0_i32_1 : i32, i32, i32
  }
  func.func @transform_7(%arg0: i32) -> (i32, i32) {
    %c0_i32 = arith.constant 0 : i32
    %c0_i32_0 = arith.constant 0 : i32
    %c0_i32_1 = arith.constant 0 : i32
    return %c0_i32, %c0_i32_0 : i32, i32
  }
  func.func @transform_8(%arg0: i32) -> (i32, i32, i32) {
    %c0_i32 = arith.constant 0 : i32
    %c0_i32_0 = arith.constant 0 : i32
    %c0_i32_1 = arith.constant 0 : i32
    return %arg0, %c0_i32, %c0_i32_0 : i32, i32, i32
  }
}

</mosaic_0001>

<bundles_post_ra>
// kernel: up_forward.1
= control target key start
LH: loop header
LB: loop body
LE: loop exit
PB: predicated region body
PF: predicated region fallthrough
CT: control target
= control target key end

     0   :  { %s2263_s27 = smov 0   ;;  %s2633_s0 = inlined_call_operand.vmem [shape: f32[2,4,64], index: 0, kind: input, shape index: {}]   ;;  %s2634_s1 = inlined_call_operand.vmem [shape: f32[2,4,256], index: 1, kind: input, shape index: {}]   ;;  %s2635_s2 = inlined_call_operand.vmem [shape: bf16[64,256], index: 2, kind: input, shape index: {}]   ;;  %s2636_s3 = inlined_call_operand.vmem [shape: bf16[2,256], index: 3, kind: input, shape index: {}]   ;;  %s2637_s4 = inlined_call_operand.vmem [shape: bf16[9,4,8], index: 4, kind: input, shape index: {}]   ;;  %s2638_s5 = inlined_call_operand.vmem [shape: f32[4,1], index: 5, kind: input, shape index: {}]   ;;  %s2639_s6 = inlined_call_operand.vmem [shape: bf16[9,4,4], index: 6, kind: input, shape index: {}]   ;;  %s2640_s7 = inlined_call_operand.vmem [shape: f32[4,1], index: 7, kind: input, shape index: {}]   ;;  %s2641_s8 = inlined_call_operand.vmem [shape: f32[2,4,256], index: 8, kind: output, shape index: {}]  }
   0x1 LB: > { %s2015_s28 = sadd.s32 4294967295, %s2206_s27   ;;  %p2019_p0 = scmp.ge.s32.totalorder %s2206_s27, 1  ;;  %s2206_s27 = sphi %s2263_s27, %s18_s27  }
   0x2   : > { %p271_p1 = scmp.lt.s32.totalorder %s2206_s27, 3 }
   0x4   : > { %p272_p2 = pnand %p2019_p0, %p271_p1 }
   0x5   : > { %v2173_v0 = vld [vmem:[%s2635_s2 + $0x4] ss:$8 sps:$4 sm:$0xff] (!%p272_p2)   ;;  %p309_p3 = scmp.lt.s32.totalorder (!%p272_p2), %s2015_s28, 1  ;;  %v2175_v1 = vld [vmem:[%s2635_s2] ss:$8 sps:$4 sm:$0xff] (!%p272_p2)   ;;  %v2208_v2 = vmov (!%p272_p2), 0   ;;  %v457_v5 = vlaneseq (!%p272_p2) }
   0x6   : > { %275 = sbr.rel (%p272_p2) target bundleno = 1027 (0x403), region = 52  ;;  %425 = vmatprep.mubr.bf16.mxu0 (!%p272_p2), %v2208_v2  ;;  %324 = vst [vmem:[#allocation2] sm:$0xf] (!%p272_p2), %v2208_v2  ;;  %325 = vst [vmem:[#allocation2 + $0xc] sm:$0xf] (!%p272_p2), %v2208_v2  ;;  %575 = vmatprep.mubr.bf16.mxu1 (!%p272_p2), %v2208_v2  ;;  %vm389_vm0 = vcmask (!%p272_p2), 523264  }
   0x7   : > { %393 = vmatprep.subr.bf16.mxu0 (!%p272_p2), %v2173_v0  ;;  %v2176_v3 = vld [vmem:[%s2635_s2 + $0x14] ss:$8 sps:$4 sm:$0xff] (!%p272_p2)   ;;  %2172 = vset.pattern.permute.xlu0 (!%p272_p2), %v2208_v2  ;;  %v2178_v4 = vld [vmem:[%s2635_s2 + $0x10] ss:$8 sps:$4 sm:$0xff] (!%p272_p2)   ;;  %v2179_v6 = vld [vmem:[%s2635_s2 + $0x24] ss:$8 sps:$4 sm:$0xff] (!%p272_p2)  }
   0x8   : > { %394 = vmatpush1.bf16.msra.mxu0 (!%p272_p2), %v2175_v1  ;;  %v2036_v7 = vld.sshfl [vmem:[%s2636_s3] sm:$0x11 pattern:$0x75316420] (!%p272_p2)  ;;  %v2209_v11 = vmov (!%p272_p2), 1966171168  }
   0x9   : > { %395 = vmatprep.subr.bf16.mxu0 (!%p272_p2), %v2176_v3  ;;  %v2181_v9 = vld [vmem:[%s2635_s2 + $0x20] ss:$8 sps:$4 sm:$0xff] (!%p272_p2)   ;;  %v455_v12 = vunpack.c.l.s4 (!%p272_p2), %v2209_v11  ;;  %v458_v13 = vshrl.u32 (!%p272_p2), %v457_v5, 7  ;;  %v2182_v14 = vld [vmem:[%s2635_s2 + $0x34] ss:$8 sps:$4 sm:$0xff] (!%p272_p2)   ;;  %v453_v16 = vcombine.high (!%p272_p2), %v2036_v7, %v2036_v7  ;;  %s2210_s13 = smov (!%p272_p2), 127  }
   0xa   : > { %v2184_v18 = vld [vmem:[%s2635_s2 + $0x30] ss:$8 sps:$4 sm:$0xff] (!%p272_p2)   ;;  %s2211_s14 = smov (!%p272_p2), 111   ;;  %s2212_s15 = smov (!%p272_p2), 1   ;;  %vm506_vm1 = vcmask (!%p272_p2), 908288   ;;  %vm659_vm2 = vcmask (!%p272_p2), 924672  }
   0xb   : > { %v456_v17 = vunpack.c.0.s8 (!%p272_p2), %v455_v12  ;;  %v473_v23 = vsub.s32 (!%p272_p2), 0, %v458_v13  ;;  %s2213_s16 = smov (!%p272_p2), 113   ;;  %s2215_s19 = smov (!%p272_p2), 15   ;;  %vm739_vm3 = vcmask (!%p272_p2), 1039360   ;;  %vm761_vm4 = vcmask (!%p272_p2), 7168  }
   0xc   : > { %396 = vmatpush1.bf16.msra.mxu0 (!%p272_p2), %v2178_v4  ;;  %s2216_s20 = smov (!%p272_p2), 16   ;;  %vm681_vm5 = vcmask (!%p272_p2), 121856   ;;  %vm598_vm6 = vcmask (!%p272_p2), 138240   ;;  %vm529_vm7 = vcmask (!%p272_p2), 130048   ;;  %vm536_vm8 = vcmask (!%p272_p2), 1043456  }
   0xd   : > { %s2643_s28 = smov (!%p309_p3, %s2015_s28), 1  ;;  %397 = vmatprep.subr.bf16.mxu0 %v2179_v6  ;;  %v459_v20 = vsub.s32 %v456_v17, %v458_v13  ;;  %v2334_v47 = vld [vmem:[#allocation2 + $0xc] sm:$0xf]  ;;  %vm532_vm9 = vcmask 64512   ;;  %vm1050_vm10 = vcmask 916480   ;;  %vm1292_vm11 = vcmask 1041408  }
   0xe   : > { %s2149_s17 = sshll.u32 %s2643_s28, 3  ;;  %s2020_s18 = sshll.u32 %s2643_s28, 2  ;;  %vm1288_vm12 = vcmask 31744  }
   0xf   : > { %s317_s21 = scalar_lea.vmem %s2634_s1, %s2149_s17  ;;  %s312_s10 = scalar_lea.vmem %s2633_s0, %s2020_s18  ;;  %v460_v21 = vrot.slane %v2036_v7, %v459_v20  ;;  %v467_v22 = vrot.slane %v453_v16, %v459_v20 }
  0x10   : > { %v326_v8 = vld [vmem:[%s317_s21] sm:$0xff]  ;;  %398 = vmatpush1.bf16.msra.mxu0 %v2181_v9  ;;  %s2214_s18 = smov 17   ;;  %s2217_s21 = smov 112  }
  0x11   : > { %v328_v10 = vcombine.high %v326_v8, %v326_v8  ;;  %v339_v19 = vld [vmem:[%s312_s10] sm:$0xf]  ;;  %399 = vmatprep.subr.bf16.mxu0 %v2182_v14  ;;  %v469_v25 = vpack.i.b16 %v460_v21, %v460_v21  ;;  %v476_v26 = vpack.i.b16 %v467_v22, %v467_v22  ;;  %v482_v27 = vshrl.u32 %v460_v21, 16 }
  0x12   : > { %v340_v24 = vpack.c.bf16 %v339_v19, %v339_v19  ;;  %v489_v28 = vshrl.u32 %v467_v22, 16 }
  0x13   : > { %v2151_v15 = vpack.c.bf16 %v328_v10, %v326_v8  ;;  %v474_v29 = vrot.slane %v469_v25, %v473_v23  ;;  %v481_v30 = vrot.slane %v476_v26, %v473_v23  ;;  %v483_v31 = vpack.i.b16 %v482_v27, %v482_v27 }
  0x14   : > { %400 = vmatpush1.bf16.msra.mxu0 %v2184_v18  ;;  %v490_v32 = vpack.i.b16 %v489_v28, %v489_v28 }
  0x15   : > { %338 = vst [vmem:[#allocation2 + $0x4] sm:$0x33] %v2151_v15  ;;  %v2315_v33 = vcombine.low %v474_v29, %v481_v30  ;;  %v488_v34 = vrot.slane %v483_v31, %v473_v23 }
  0x16   : > { %v495_v35 = vrot.slane %v490_v32, %v473_v23 }
  0x17   : > { %2034 = vmatmul.mubr.msk.bf16.vlgmr.msra.gmra.mrb[0].mxu0 %vm389_vm0, %v340_v24  ;;  %736 = vrot.lane.b32.xlu1 %v2315_v33, %s2210_s13 }
  0x18   : > { %805 = vmatprep.mubr.bf16.mxu0 %v2208_v2  ;;  %503 = vrot.lane.b32.xlu0 %v2315_v33, %s2211_s14  ;;  %v2322_v36 = vcombine.low %v488_v34, %v495_v35  ;;  %v2082_v34 = vcombine.low %v2334_v47, %v2334_v47 }
  0x1b   : > { %878 = vrot.lane.b32.xlu1 %v2322_v36, %s2212_s15 }
  0x1c   : > { %656 = vrot.lane.b32.xlu0 %v2322_v36, %s2213_s16 }
  0x1f   : > { %1105 = vrot.lane.b32.xlu1 %v2322_v36, %s2214_s18 }
  0x20   : > { %956 = vrot.lane.b32.xlu0 %v2315_v33, %s2215_s19 }
  0x89   : > { %v737_v45 = vpop.permute.xlu1 %736 }
  0x8a   : > { %v504_v37 = vpop.permute.xlu0 %503  ;;  %v738_v3 = vrot.slane %v737_v45, 4 }
  0x8b   : > { %v505_v51 = vrot.slane %v504_v37, 4 }
  0x8c   : > { %v740_v8 = vsel %vm739_vm3, %v738_v3, %v737_v45 }
  0x8d   : > { %v879_v52 = vpop.permute.xlu1 %878  ;;  %v507_v59 = vsel %vm506_vm1, %v505_v51, %v504_v37 }
  0x8e   : > { %v657_v43 = vpop.permute.xlu0 %656  ;;  %v880_v53 = vrot.slane %v879_v52, 4 }
  0x8f   : > { %v658_v63 = vrot.slane %v657_v43, 4 }
  0x90   : > { %v885_v57 = vmul.bf16 %v880_v53, %v2334_v47  ;;  %v881_v19 = vsel %vm761_vm4, %v880_v53, %v879_v52 }
  0x91   : > { %v660_v4 = vsel %vm659_vm2, %v658_v63, %v657_v43  ;;  %v1106_v20 = vpop.permute.xlu1 %1105 }
  0x92   : > { %v2332_v46 = vpop.permute.xlu0 %956  ;;  %v2070_v62 = vcombine.low %v885_v57, %v885_v57  ;;  %v1107_v24 = vrot.slane %v1106_v20, 4 }
  0x93   : > { %v958_v48 = vrot.slane %v2332_v46, 4 }
  0x94   : > { %v1108_v29 = vsel %vm598_vm6, %v1107_v24, %v1106_v20  ;;  %v1112_v35 = vmul.bf16 %v1107_v24, %v2334_v47 }
  0x95   : > { %v963_v50 = vmul.bf16 %v958_v48, %v2334_v47  ;;  %v959_v25 = vsel %vm681_vm5, %v958_v48, %v2332_v46 }
  0x97   : > { %v2076_v58 = vcombine.low %v963_v50, %v963_v50 }
  0xea   : > { %v427_v38 = vpop.f32.mrb[0].mxu0 }
  0xeb   : > { %v429_v39 = vpop.f32.mrb[1].mxu0 }
  0xec   : > { %v2152_v40 = vpack.c.bf16 %v429_v39, %v427_v38  ;;  %v431_v41 = vpop.f32.mrb[2].mxu0  ;;  %v2088_v39 = vcombine.low %v1112_v35, %v1112_v35 }
  0xed   : > { %v432_v42 = vpop.f32.mrb[3].mxu0 }
  0xee   : > { %v441_v44 = vrot.slane %v2152_v40, 6  ;;  %v1183_v40 = vld [vmem:[%s2638_s5] sm:$0xf] }
  0xf0   : > { %443 = vst [vmem:[#allocation2 + $0x4] sm:$0xcc] %v441_v44 }
  0xf7   : > { %v496_v49 = vld [vmem:[#allocation2] sm:$0xff]  ;;  %v497_v56 = vld [vmem:[#allocation2 + $0x8] sm:$0xf] }
  0xf8   : > { %v2040_v54 = vcombine.high %v496_v49, %v496_v49  ;;  %v2039_v55 = vcombine.low %v496_v49, %v496_v49  ;;  %v510_v60 = vmul.bf16 %v507_v59, %v496_v49  ;;  %v2041_v61 = vcombine.low %v497_v56, %v497_v56  ;;  %v876_v18 = vld [vmem:[#allocation2 + $0x4] sm:$0xff] }
  0xf9   : > { %v511_v0 = vmul.bf16 %v505_v51, %v497_v56  ;;  %v663_v5 = vmul.bf16 %v660_v4, %v496_v49  ;;  %v743_v9 = vmul.bf16 %v740_v8, %v496_v49  ;;  %v664_v10 = vmul.bf16 %v658_v63, %v497_v56 }
  0xfa   : > { %525 = vrot.lane.b32.xlu1 %v2040_v54, %s2216_s20  ;;  %523 = vrot.lane.b32.xlu0 %v2039_v55, %s2216_s20  ;;  %v2044_v1 = vcombine.low %v510_v60, %v510_v60  ;;  %v2045_v6 = vcombine.high %v510_v60, %v510_v60  ;;  %v744_v13 = vmul.bf16 %v738_v3, %v497_v56  ;;  %v512_v54 = vld [vmem:[%s2637_s4] sm:$0x3] }
  0xfb   : > { %v2046_v7 = vcombine.low %v511_v0, %v511_v0  ;;  %v2051_v11 = vcombine.low %v663_v5, %v663_v5  ;;  %v2052_v12 = vcombine.high %v663_v5, %v663_v5  ;;  %v2053_v14 = vcombine.low %v664_v10, %v664_v10 }
  0xfc   : > { %v2057_v15 = vcombine.low %v743_v9, %v743_v9  ;;  %v2058_v16 = vcombine.high %v743_v9, %v743_v9  ;;  %v2059_v17 = vcombine.low %v744_v13, %v744_v13  ;;  %v884_v21 = vmul.bf16 %v881_v19, %v876_v18  ;;  %v2062_v9 = vld [vmem:[%s2637_s4 + $0x8] sm:$0x3] }
  0xfd   : > { %v2357_v22 = vcombine.low %v876_v18, %v876_v18  ;;  %v2359_v23 = vcombine.high %v876_v18, %v876_v18  ;;  %v962_v26 = vmul.bf16 %v959_v25, %v876_v18  ;;  %v1111_v30 = vmul.bf16 %v1108_v29, %v876_v18 }
  0xfe   : > { %978 = vrot.lane.b32.xlu1 %v2076_v58, %s2213_s16  ;;  %527 = vrot.lane.b32.xlu0 %v2041_v61, %s2216_s20  ;;  %v2068_v27 = vcombine.low %v884_v21, %v884_v21  ;;  %v2069_v28 = vcombine.high %v884_v21, %v884_v21 }
  0xff   : > { %v2075_v31 = vcombine.high %v962_v26, %v962_v26  ;;  %v2074_v32 = vcombine.low %v962_v26, %v962_v26  ;;  %v2086_v37 = vcombine.low %v1111_v30, %v1111_v30  ;;  %v2087_v38 = vcombine.high %v1111_v30, %v1111_v30 }
 0x100   : > { %v828_v5 = vsel %vm536_vm8, %v2357_v22, 0 }
 0x102   : > { %900 = vrot.lane.b32.xlu0 %v2070_v62, %s2210_s13  ;;  %592 = vrot.lane.b32.xlu1 %v2044_v1, %s2214_s18  ;;  %v2050_v62 = vld [vmem:[%s2637_s4 + $0x4] sm:$0x3] }
 0x106   : > { %594 = vrot.lane.b32.xlu0 %v2045_v6, %s2214_s18  ;;  %596 = vrot.lane.b32.xlu1 %v2046_v7, %s2214_s18  ;;  %v2056_v6 = vld [vmem:[%s2637_s4 + $0x6] sm:$0x3] }
 0x10a   : > { %675 = vrot.lane.b32.xlu0 %v2051_v11, %s2215_s19  ;;  %677 = vrot.lane.b32.xlu1 %v2052_v12, %s2215_s19 }
 0x10e   : > { %679 = vrot.lane.b32.xlu0 %v2053_v14, %s2215_s19  ;;  %755 = vrot.lane.b32.xlu1 %v2057_v15, %s2212_s15  ;;  %v2067_v15 = vld [vmem:[%s2637_s4 + $0xa] sm:$0x3] }
 0x112   : > { %757 = vrot.lane.b32.xlu0 %v2058_v16, %s2212_s15  ;;  %759 = vrot.lane.b32.xlu1 %v2059_v17, %s2212_s15 }
 0x116   : > { %1044 = vrot.lane.b32.xlu0 %v2357_v22, %s2217_s21  ;;  %1046 = vrot.lane.b32.xlu1 %v2359_v23, %s2217_s21  ;;  %v2073_v22 = vld [vmem:[%s2637_s4 + $0xc] sm:$0x3] }
 0x11a   : > { %896 = vrot.lane.b32.xlu0 %v2068_v27, %s2210_s13  ;;  %898 = vrot.lane.b32.xlu1 %v2069_v28, %s2210_s13  ;;  %v2079_v27 = vld [vmem:[%s2637_s4 + $0xe] sm:$0x3] }
 0x11e   : > { %976 = vrot.lane.b32.xlu0 %v2075_v31, %s2213_s16  ;;  %974 = vrot.lane.b32.xlu1 %v2074_v32, %s2213_s16 }
 0x122   : > { %1048 = vrot.lane.b32.xlu0 %v2082_v34, %s2217_s21  ;;  %1123 = vrot.lane.b32.xlu1 %v2086_v37, %s2211_s14  ;;  %v2085_v34 = vld [vmem:[%s2637_s4 + $0x10] sm:$0x3] }
 0x126   : > { %1125 = vrot.lane.b32.xlu0 %v2087_v38, %s2211_s14  ;;  %1127 = vrot.lane.b32.xlu1 %v2088_v39, %s2211_s14 }
 0x12a   : > { %1186 = vperm.xlu0 %2172, %v1183_v40   ;;  %1261 = vrot.lane.b32.xlu1 %v2315_v33, %s2211_s14 }
 0x12e   : > { %1489 = vrot.lane.b32.xlu0 %v2315_v33, %s2210_s13  ;;  %1411 = vrot.lane.b32.xlu1 %v2322_v36, %s2213_s16 }
 0x132   : > { %1707 = vrot.lane.b32.xlu0 %v2315_v33, %s2215_s19  ;;  %1629 = vrot.lane.b32.xlu1 %v2322_v36, %s2212_s15 }
 0x136   : > { %1855 = vrot.lane.b32.xlu1 %v2322_v36, %s2214_s18  ;;  %v2038_v36 = vld [vmem:[%s2637_s4 + $0x2] sm:$0x3] }
 0x16c   : > { %v526_v41 = vpop.permute.xlu1 %525  ;;  %v524_v42 = vpop.permute.xlu0 %523 }
 0x16d   : > { %v530_v43 = vsel %vm529_vm7, %v524_v42, %v526_v41 }
 0x16e   : > { %v538_v33 = vsel %vm536_vm8, %v530_v43, 0 }
 0x170   : > { %v2395_v44 = vpop.permute.xlu1 %978  ;;  %v528_v45 = vpop.permute.xlu0 %527 }
 0x171   : > { %v531_v46 = vsel %vm529_vm7, %v526_v41, %v528_v45  ;;  %v2492_v45 = vld [vmem:[#allocation2 + $0xc] sm:$0x3] }
 0x172   : > { %2042 = vmatprep.subr.msk.bf16.mxu1 %vm536_vm8, %v531_v46 }
 0x173   : > { %544 = vmatpush1.bf16.msra.mxu1 %v538_v33 }
 0x174   : > { %v901_v47 = vpop.permute.xlu0 %900  ;;  %v593_v48 = vpop.permute.xlu1 %592 }
 0x176   : > { %2043 = vmatmul.mubr.msk.bf16.vlgmr.msra.gmra.mrb[0].mxu1 %vm532_vm9, %v2038_v36 }
 0x177   : > { %642 = vmatprep.mubr.bf16.mxu1 %v2208_v2 }
 0x178   : > { %v595_v49 = vpop.permute.xlu0 %594  ;;  %v597_v50 = vpop.permute.xlu1 %596 }
 0x179   : > { %v599_v51 = vsel %vm598_vm6, %v593_v48, %v595_v49  ;;  %v600_v52 = vsel %vm598_vm6, %v595_v49, %v597_v50 }
 0x17a   : > { %v605_v53 = vsel %vm536_vm8, %v599_v51, 0  ;;  %2047 = vmatprep.subr.msk.bf16.mxu1 %vm536_vm8, %v600_v52 }
 0x17b   : > { %611 = vmatpush1.bf16.msra.mxu1 %v605_v53 }
 0x17c   : > { %v676_v55 = vpop.permute.xlu0 %675  ;;  %v678_v56 = vpop.permute.xlu1 %677 }
 0x17d   : > { %v682_v57 = vsel %vm681_vm5, %v676_v55, %v678_v56 }
 0x17e   : > { %2048 = vmatmul.mubr.msk.bf16.vlgmr.msra.gmra.mrb[4].mxu1 %vm532_vm9, %v512_v54  ;;  %v688_v61 = vsel %vm536_vm8, %v682_v57, 0 }
 0x17f   : > { %725 = vmatprep.mubr.bf16.mxu1 %v2208_v2 }
 0x180   : > { %v680_v58 = vpop.permute.xlu0 %679  ;;  %v756_v59 = vpop.permute.xlu1 %755 }
 0x181   : > { %v683_v60 = vsel %vm681_vm5, %v678_v56, %v680_v58 }
 0x182   : > { %2054 = vmatprep.subr.msk.bf16.mxu1 %vm536_vm8, %v683_v60 }
 0x183   : > { %694 = vmatpush1.bf16.msra.mxu1 %v688_v61 }
 0x184   : > { %v758_v63 = vpop.permute.xlu0 %757  ;;  %2065 = vmatprep.subr.msk.bf16.mxu1 %vm536_vm8, %v2359_v23  ;;  %v760_v0 = vpop.permute.xlu1 %759 }
 0x185   : > { %v762_v1 = vsel %vm761_vm4, %v756_v59, %v758_v63  ;;  %v763_v3 = vsel %vm761_vm4, %v758_v63, %v760_v0 }
 0x186   : > { %v768_v4 = vsel %vm536_vm8, %v762_v1, 0  ;;  %2055 = vmatmul.mubr.msk.bf16.vlgmr.msra.gmra.mrb[8].mxu1 %vm532_vm9, %v2050_v62  ;;  %2060 = vmatprep.subr.msk.bf16.mxu0 %vm536_vm8, %v763_v3 }
 0x187   : > { %774 = vmatpush1.bf16.msra.mxu0 %v768_v4  ;;  %834 = vmatpush1.bf16.msra.mxu1 %v828_v5 }
 0x188   : > { %v1045_v7 = vpop.permute.xlu0 %1044  ;;  %v1047_v8 = vpop.permute.xlu1 %1046  ;;  %865 = vmatprep.mubr.bf16.mxu1 %v2208_v2 }
 0x189   : > { %v1051_v21 = vsel %vm1050_vm10, %v1045_v7, %v1047_v8 }
 0x18a   : > { %2061 = vmatmul.mubr.msk.bf16.vlgmr.msra.gmra.mrb[4].mxu0 %vm532_vm9, %v2056_v6  ;;  %v1057_v26 = vsel %vm536_vm8, %v1051_v21, 0 }
 0x18b   : > { %945 = vmatprep.mubr.bf16.mxu0 %v2208_v2 }
 0x18c   : > { %v897_v10 = vpop.permute.xlu0 %896  ;;  %v899_v11 = vpop.permute.xlu1 %898 }
 0x18d   : > { %v902_v12 = vsel %vm739_vm3, %v897_v10, %v899_v11  ;;  %v903_v13 = vsel %vm739_vm3, %v899_v11, %v901_v47 }
 0x18e   : > { %v908_v14 = vsel %vm536_vm8, %v902_v12, 0  ;;  %2066 = vmatmul.mubr.msk.bf16.vlgmr.msra.gmra.mrb[12].mxu1 %vm532_vm9, %v2062_v9  ;;  %2071 = vmatprep.subr.msk.bf16.mxu0 %vm536_vm8, %v903_v13 }
 0x18f   : > { %914 = vmatpush1.bf16.msra.mxu0 %v908_v14  ;;  %1023 = vmatprep.mubr.bf16.mxu1 %v2208_v2 }
 0x190   : > { %v977_v16 = vpop.permute.xlu0 %976  ;;  %v975_v17 = vpop.permute.xlu1 %974 }
 0x191   : > { %v981_v18 = vsel %vm659_vm2, %v977_v16, %v2395_v44  ;;  %v980_v19 = vsel %vm659_vm2, %v975_v17, %v977_v16 }
 0x192   : > { %v986_v20 = vsel %vm536_vm8, %v980_v19, 0  ;;  %2072 = vmatmul.mubr.msk.bf16.vlgmr.msra.gmra.mrb[8].mxu0 %vm532_vm9, %v2067_v15  ;;  %2077 = vmatprep.subr.msk.bf16.mxu1 %vm536_vm8, %v981_v18 }
 0x193   : > { %992 = vmatpush1.bf16.msra.mxu1 %v986_v20  ;;  %1094 = vmatprep.mubr.bf16.mxu0 %v2208_v2 }
 0x194   : > { %v1049_v23 = vpop.permute.xlu0 %1048  ;;  %v1124_v24 = vpop.permute.xlu1 %1123 }
 0x195   : > { %v1052_v25 = vsel %vm1050_vm10, %v1047_v8, %v1049_v23 }
 0x196   : > { %2078 = vmatmul.mubr.msk.bf16.vlgmr.msra.gmra.mrb[16].mxu1 %vm532_vm9, %v2073_v22  ;;  %2083 = vmatprep.subr.msk.bf16.mxu0 %vm536_vm8, %v1052_v25 }
 0x197   : > { %1063 = vmatpush1.bf16.msra.mxu0 %v1057_v26  ;;  %1172 = vmatprep.mubr.bf16.mxu1 %v2208_v2 }
 0x198   : > { %v1126_v28 = vpop.permute.xlu0 %1125  ;;  %v1128_v29 = vpop.permute.xlu1 %1127 }
 0x199   : > { %v1129_v30 = vsel %vm506_vm1, %v1124_v24, %v1126_v28  ;;  %v1130_v31 = vsel %vm506_vm1, %v1126_v28, %v1128_v29 }
 0x19a   : > { %v1135_v32 = vsel %vm536_vm8, %v1129_v30, 0  ;;  %2084 = vmatmul.mubr.msk.bf16.vlgmr.msra.gmra.mrb[12].mxu0 %vm532_vm9, %v2079_v27  ;;  %2089 = vmatprep.subr.msk.bf16.mxu1 %vm536_vm8, %v1130_v31 }
 0x19b   : > { %1141 = vmatpush1.bf16.msra.mxu1 %v1135_v32  ;;  %1331 = vmatprep.mubr.bf16.mxu0 %v2208_v2 }
 0x19c   : > { %v2480_v37 = vpop.permute.xlu1 %1261 }
 0x19e   : > { %2090 = vmatmul.mubr.msk.bf16.vlgmr.msra.gmra.mrb[20].mxu1 %vm532_vm9, %v2085_v34 }
 0x19f   : > { %1397 = vmatprep.mubr.bf16.mxu1 %v2208_v2 }
 0x1a0   : > { %v2484_v39 = vpop.permute.xlu1 %1411 }
 0x1a4   : > { %v1630_v41 = vpop.permute.xlu1 %1629 }
 0x1a5   : > { %v1631_v42 = vrot.slane %v1630_v41, 4 }
 0x1a7   : > { %v2490_v44 = vsel %vm761_vm4, %v1631_v42, %v1630_v41  ;;  %v1636_v33 = vmul.bf16 %v1631_v42, %v2492_v45 }
 0x1a9   : > { %v2478_v35 = vpop.permute.xlu0 %1186  ;;  %v2126_v47 = vcombine.low %v1636_v33, %v1636_v33 }
 0x1ab   : > { %1651 = vrot.lane.b32.xlu0 %v2126_v47, %s2210_s13 }
 0x1ad   : > { %v2482_v38 = vpop.permute.xlu0 %1489 }
 0x1b1   : > { %v2486_v40 = vpop.permute.xlu0 %1707 }
 0x1b2   : > { %v1709_v43 = vrot.slane %v2486_v40, 4 }
 0x1b4   : > { %v1714_v46 = vmul.bf16 %v1709_v43, %v2492_v45 }
 0x1b6   : > { %v2132_v36 = vcombine.low %v1714_v46, %v1714_v46 }
 0x1b8   : > { %1729 = vrot.lane.b32.xlu1 %v2132_v36, %s2213_s16 }
 0x249   : > { %v577_v48 = vpop.f32.mrb[0].mxu1 }
 0x24a   : > { %v579_v49 = vpop.f32.mrb[1].mxu1 }
 0x24b   : > { %v581_v50 = vpop.f32.mrb[2].mxu1 }
 0x24c   : > { %v582_v51 = vpop.f32.mrb[3].mxu1  ;;  %v1263_v50 = vrot.slane %v2480_v37, 4 }
 0x251   : > { %v644_v52 = vpop.f32.mrb[4].mxu1 }
 0x252   : > { %v645_v53 = vadd.f32 %v644_v52, %v577_v48  ;;  %v646_v54 = vpop.f32.mrb[5].mxu1  ;;  %v1264_v52 = vsel %vm506_vm1, %v1263_v50, %v2480_v37 }
 0x253   : > { %v647_v55 = vadd.f32 %v646_v54, %v579_v49  ;;  %v648_v56 = vpop.f32.mrb[6].mxu1 }
 0x254   : > { %v649_v57 = vpop.f32.mrb[7].mxu1 }
 0x255   : > { %v1413_v57 = vrot.slane %v2484_v39, 4 }
 0x257   : > { %v1414_v37 = vsel %vm659_vm2, %v1413_v57, %v2484_v39 }
 0x259   : > { %v727_v58 = vpop.f32.mrb[8].mxu1 }
 0x25a   : > { %v734_v59 = vadd.f32 %v727_v58, %v645_v53  ;;  %v729_v60 = vpop.f32.mrb[9].mxu1 }
 0x25b   : > { %v735_v61 = vadd.f32 %v729_v60, %v647_v55  ;;  %v731_v62 = vpop.f32.mrb[10].mxu1  ;;  %v1491_v60 = vrot.slane %v2482_v38, 4 }
 0x25c   : > { %v732_v63 = vpop.f32.mrb[11].mxu1 }
 0x25d   : > { %v807_v0 = vpop.f32.mrb[4].mxu0 }
 0x25e   : > { %v814_v1 = vadd.f32 %v807_v0, %v734_v59  ;;  %v809_v3 = vpop.f32.mrb[5].mxu0  ;;  %v1492_v0 = vsel %vm739_vm3, %v1491_v60, %v2482_v38 }
 0x25f   : > { %v815_v4 = vadd.f32 %v809_v3, %v735_v61  ;;  %v811_v5 = vpop.f32.mrb[6].mxu0 }
 0x260   : > { %v812_v6 = vpop.f32.mrb[7].mxu0 }
 0x261   : > { %v867_v7 = vpop.f32.mrb[12].mxu1 }
 0x262   : > { %v874_v8 = vadd.f32 %v867_v7, %v814_v1  ;;  %v869_v9 = vpop.f32.mrb[13].mxu1 }
 0x263   : > { %v875_v10 = vadd.f32 %v869_v9, %v815_v4  ;;  %v871_v11 = vpop.f32.mrb[14].mxu1 }
 0x264   : > { %v872_v12 = vpop.f32.mrb[15].mxu1 }
 0x265   : > { %v947_v13 = vpop.f32.mrb[8].mxu0 }
 0x266   : > { %v954_v14 = vadd.f32 %v947_v13, %v874_v8  ;;  %v949_v15 = vpop.f32.mrb[9].mxu0 }
 0x267   : > { %v955_v16 = vadd.f32 %v949_v15, %v875_v10  ;;  %v951_v17 = vpop.f32.mrb[10].mxu0  ;;  %v1856_v10 = vpop.permute.xlu1 %1855  ;;  %v1710_v15 = vsel %vm681_vm5, %v1709_v43, %v2486_v40  ;;  %v2138_v40 = vcombine.low %v2492_v45, %v2492_v45 }
 0x268   : > { %v952_v18 = vpop.f32.mrb[11].mxu0  ;;  %v1857_v13 = vrot.slane %v1856_v10, 4 }
 0x269   : > { %v1025_v19 = vpop.f32.mrb[16].mxu1 }
 0x26a   : > { %v1032_v20 = vadd.f32 %v1025_v19, %v954_v14  ;;  %v1027_v21 = vpop.f32.mrb[17].mxu1  ;;  %v1858_v18 = vsel %vm598_vm6, %v1857_v13, %v1856_v10  ;;  %v1862_v43 = vmul.bf16 %v1857_v13, %v2492_v45 }
 0x26b   : > { %v1033_v22 = vadd.f32 %v1027_v21, %v955_v16  ;;  %v1029_v23 = vpop.f32.mrb[18].mxu1 }
 0x26c   : > { %v1030_v24 = vpop.f32.mrb[19].mxu1  ;;  %v2144_v23 = vcombine.low %v1862_v43, %v1862_v43 }
 0x26d   : > { %v1096_v25 = vpop.f32.mrb[12].mxu0 }
 0x26e   : > { %v1103_v26 = vadd.f32 %v1096_v25, %v1032_v20  ;;  %v1098_v27 = vpop.f32.mrb[13].mxu0  ;;  %v1933_v25 = vld [vmem:[%s2640_s7] sm:$0xf] }
 0x26f   : > { %v1104_v28 = vadd.f32 %v1098_v27, %v1033_v22  ;;  %v1100_v29 = vpop.f32.mrb[14].mxu0  ;;  %v1652_v27 = vpop.permute.xlu0 %1651 }
 0x270   : > { %v1101_v30 = vpop.f32.mrb[15].mxu0 }
 0x271   : > { %v1174_v31 = vpop.f32.mrb[20].mxu1 }
 0x272   : > { %v1181_v32 = vadd.f32 %v1174_v31, %v1103_v26  ;;  %v1176_v34 = vpop.f32.mrb[21].mxu1  ;;  %v2545_v26 = vpop.permute.xlu1 %1729 }
 0x273   : > { %v1182_v41 = vadd.f32 %v1176_v34, %v1104_v28  ;;  %v1178_v42 = vpop.f32.mrb[22].mxu1 }
 0x274   : > { %v1189_v46 = vadd.f32 %v2478_v35, %v1181_v32  ;;  %v1179_v33 = vpop.f32.mrb[23].mxu1  ;;  %v2094_v42 = vld [vmem:[%s2639_s6 + $0x2] sm:$0x3] }
 0x275   : > { %v1190_v36 = vadd.f32 %v2478_v35, %v1182_v41 }
 0x276   : > { %v1191_v47 = vmax.f32 %v1189_v46, 0.0 }
 0x277   : > { %v1192_v48 = vmax.f32 %v1190_v36, 0.0 }
 0x279   : > { %v2153_v49 = vpack.c.bf16 %v1192_v48, %v1191_v47 }
 0x27b   : > { %1201 = vst [vmem:[#allocation2 + $0x4] sm:$0x33] %v2153_v49  ;;  %v1269_v49 = vld [vmem:[%s2639_s6] sm:$0x3] }
 0x282   : > { %v1254_v51 = vld [vmem:[#allocation2] sm:$0x33]  ;;  %v1255_v54 = vld [vmem:[#allocation2 + $0x8] sm:$0x3] }
 0x283   : > { %v2096_v53 = vcombine.high %v1254_v51, %v1254_v51  ;;  %v2095_v55 = vcombine.low %v1254_v51, %v1254_v51  ;;  %v1267_v56 = vmul.bf16 %v1264_v52, %v1254_v51  ;;  %v1268_v58 = vmul.bf16 %v1263_v50, %v1255_v54  ;;  %v1627_v9 = vld [vmem:[#allocation2 + $0x4] sm:$0x33] }
 0x284   : > { %v2097_v59 = vcombine.low %v1255_v54, %v1255_v54  ;;  %v1417_v61 = vmul.bf16 %v1414_v37, %v1254_v51  ;;  %v1495_v1 = vmul.bf16 %v1492_v0, %v1254_v51  ;;  %v1418_v4 = vmul.bf16 %v1413_v57, %v1255_v54 }
 0x285   : > { %1282 = vrot.lane.b32.xlu1 %v2096_v53, %s2216_s20  ;;  %1280 = vrot.lane.b32.xlu0 %v2095_v55, %s2216_s20  ;;  %v2100_v35 = vcombine.low %v1267_v56, %v1267_v56  ;;  %v2102_v62 = vcombine.low %v1268_v58, %v1268_v58  ;;  %v2101_v63 = vcombine.high %v1267_v56, %v1267_v56  ;;  %v1567_v53 = vld [vmem:[#allocation2 + $0x4] sm:$0x33] }
 0x286   : > { %v2108_v3 = vcombine.high %v1417_v61, %v1417_v61  ;;  %v2107_v5 = vcombine.low %v1417_v61, %v1417_v61  ;;  %v1496_v39 = vmul.bf16 %v1491_v60, %v1255_v54  ;;  %v2113_v6 = vcombine.low %v1495_v1, %v1495_v1 }
 0x287   : > { %v2109_v7 = vcombine.low %v1418_v4, %v1418_v4  ;;  %v2114_v38 = vcombine.high %v1495_v1, %v1495_v1  ;;  %v1635_v11 = vmul.bf16 %v2490_v44, %v1627_v9  ;;  %v2137_v12 = vcombine.high %v1627_v9, %v1627_v9  ;;  %v2112_v1 = vld [vmem:[%s2639_s6 + $0x6] sm:$0x3] }
 0x288   : > { %v2115_v8 = vcombine.low %v1496_v39, %v1496_v39  ;;  %v2136_v14 = vcombine.low %v1627_v9, %v1627_v9  ;;  %v1713_v16 = vmul.bf16 %v1710_v15, %v1627_v9  ;;  %v1861_v44 = vmul.bf16 %v1858_v18, %v1627_v9 }
 0x289   : > { %1348 = vrot.lane.b32.xlu1 %v2100_v35, %s2214_s18  ;;  %1284 = vrot.lane.b32.xlu0 %v2097_v59, %s2216_s20  ;;  %v2125_v17 = vcombine.high %v1635_v11, %v1635_v11  ;;  %v2124_v19 = vcombine.low %v1635_v11, %v1635_v11  ;;  %v2120_v57 = vcombine.high %v1567_v53, %v1567_v53  ;;  %v2106_v59 = vld [vmem:[%s2639_s6 + $0x4] sm:$0x3] }
 0x28a   : > { %v2130_v20 = vcombine.low %v1713_v16, %v1713_v16  ;;  %v2131_v21 = vcombine.high %v1713_v16, %v1713_v16  ;;  %v2142_v22 = vcombine.low %v1861_v44, %v1861_v44  ;;  %v2143_v24 = vcombine.high %v1861_v44, %v1861_v44  ;;  %v2129_v16 = vld [vmem:[%s2639_s6 + $0xc] sm:$0x3] }
 0x28b   : > { %v2119_v35 = vcombine.low %v1567_v53, %v1567_v53 }
 0x28d   : > { %1352 = vrot.lane.b32.xlu1 %v2102_v62, %s2214_s18  ;;  %1350 = vrot.lane.b32.xlu0 %v2101_v63, %s2214_s18  ;;  %v1579_v63 = vsel %vm1292_vm11, %v2119_v35, 0 }
 0x291   : > { %1431 = vrot.lane.b32.xlu1 %v2108_v3, %s2215_s19  ;;  %1429 = vrot.lane.b32.xlu0 %v2107_v5, %s2215_s19  ;;  %v2118_v5 = vld [vmem:[%s2639_s6 + $0x8] sm:$0x3] }
 0x295   : > { %1507 = vrot.lane.b32.xlu1 %v2113_v6, %s2212_s15  ;;  %1433 = vrot.lane.b32.xlu0 %v2109_v7, %s2215_s19 }
 0x299   : > { %1511 = vrot.lane.b32.xlu1 %v2115_v8, %s2212_s15  ;;  %1509 = vrot.lane.b32.xlu0 %v2114_v38, %s2212_s15  ;;  %v2123_v38 = vld [vmem:[%s2639_s6 + $0xa] sm:$0x3] }
 0x29d   : > { %1797 = vrot.lane.b32.xlu1 %v2137_v12, %s2217_s21  ;;  %1795 = vrot.lane.b32.xlu0 %v2136_v14, %s2217_s21 }
 0x2a1   : > { %1649 = vrot.lane.b32.xlu1 %v2125_v17, %s2210_s13  ;;  %1647 = vrot.lane.b32.xlu0 %v2124_v19, %s2210_s13 }
 0x2a5   : > { %1725 = vrot.lane.b32.xlu1 %v2130_v20, %s2213_s16  ;;  %1727 = vrot.lane.b32.xlu0 %v2131_v21, %s2213_s16  ;;  %v2135_v20 = vld [vmem:[%s2639_s6 + $0xe] sm:$0x3]  ;;  %s322_s16 = scalar_lea.vmem %s2641_s8, %s2149_s17 }
 0x2a9   : > { %1873 = vrot.lane.b32.xlu1 %v2142_v22, %s2211_s14  ;;  %1799 = vrot.lane.b32.xlu0 %v2138_v40, %s2217_s21 }
 0x2ad   : > { %1877 = vrot.lane.b32.xlu1 %v2144_v23, %s2211_s14  ;;  %1875 = vrot.lane.b32.xlu0 %v2143_v24, %s2211_s14  ;;  %v2141_v23 = vld [vmem:[%s2639_s6 + $0x10] sm:$0x3] }
 0x2b1   : > { %1936 = vperm.xlu0 %2172, %v1933_v25  }
 0x2f7   : > { %v1283_v45 = vpop.permute.xlu1 %1282  ;;  %v1281_v28 = vpop.permute.xlu0 %1280 }
 0x2f8   : > { %v1286_v29 = vsel %vm529_vm7, %v1281_v28, %v1283_v45 }
 0x2f9   : > { %v1294_v34 = vsel %vm1292_vm11, %v1286_v29, 0 }
 0x2fb   : > { %v1349_v30 = vpop.permute.xlu1 %1348  ;;  %v1285_v31 = vpop.permute.xlu0 %1284 }
 0x2fc   : > { %v1287_v32 = vsel %vm529_vm7, %v1283_v45, %v1285_v31 }
 0x2fd   : > { %2098 = vmatprep.subr.msk.bf16.mxu0 %vm1292_vm11, %v1287_v32 }
 0x2fe   : > { %1300 = vmatpush1.bf16.msra.mxu0 %v1294_v34 }
 0x2ff   : > { %v1353_v41 = vpop.permute.xlu1 %1352  ;;  %v1351_v46 = vpop.permute.xlu0 %1350 }
 0x300   : > { %v1354_v33 = vsel %vm598_vm6, %v1349_v30, %v1351_v46  ;;  %v1355_v36 = vsel %vm598_vm6, %v1351_v46, %v1353_v41 }
 0x301   : > { %v1360_v47 = vsel %vm1292_vm11, %v1354_v33, 0  ;;  %2103 = vmatprep.subr.msk.bf16.mxu1 %vm1292_vm11, %v1355_v36  ;;  %2099 = vmatmul.mubr.msk.bf16.vlgmr.msra.gmra.mrb[16].mxu0 %vm1288_vm12, %v2094_v42 }
 0x302   : > { %1366 = vmatpush1.bf16.msra.mxu1 %v1360_v47  ;;  %1478 = vmatprep.mubr.bf16.mxu0 %v2208_v2 }
 0x303   : > { %v1432_v48 = vpop.permute.xlu1 %1431  ;;  %v1430_v50 = vpop.permute.xlu0 %1429 }
 0x304   : > { %v1435_v51 = vsel %vm681_vm5, %v1430_v50, %v1432_v48 }
 0x305   : > { %2104 = vmatmul.mubr.msk.bf16.vlgmr.msra.gmra.mrb[24].mxu1 %vm1288_vm12, %v1269_v49  ;;  %v1441_v56 = vsel %vm1292_vm11, %v1435_v51, 0 }
 0x306   : > { %1556 = vmatprep.mubr.bf16.mxu1 %v2208_v2 }
 0x307   : > { %v1508_v52 = vpop.permute.xlu1 %1507  ;;  %v1434_v54 = vpop.permute.xlu0 %1433 }
 0x308   : > { %v1436_v55 = vsel %vm681_vm5, %v1432_v48, %v1434_v54 }
 0x309   : > { %2110 = vmatprep.subr.msk.bf16.mxu0 %vm1292_vm11, %v1436_v55 }
 0x30a   : > { %1447 = vmatpush1.bf16.msra.mxu0 %v1441_v56 }
 0x30b   : > { %v1512_v58 = vpop.permute.xlu1 %1511  ;;  %v1510_v60 = vpop.permute.xlu0 %1509  ;;  %2121 = vmatprep.subr.msk.bf16.mxu0 %vm1292_vm11, %v2120_v57 }
 0x30c   : > { %v1513_v37 = vsel %vm761_vm4, %v1508_v52, %v1510_v60  ;;  %v1514_v61 = vsel %vm761_vm4, %v1510_v60, %v1512_v58 }
 0x30d   : > { %v1519_v62 = vsel %vm1292_vm11, %v1513_v37, 0  ;;  %2111 = vmatmul.mubr.msk.bf16.vlgmr.msra.gmra.mrb[20].mxu0 %vm1288_vm12, %v2106_v59  ;;  %2116 = vmatprep.subr.msk.bf16.mxu1 %vm1292_vm11, %v1514_v61 }
 0x30e   : > { %1525 = vmatpush1.bf16.msra.mxu1 %v1519_v62  ;;  %1585 = vmatpush1.bf16.msra.mxu0 %v1579_v63 }
 0x30f   : > { %v1798_v0 = vpop.permute.xlu1 %1797  ;;  %v1796_v3 = vpop.permute.xlu0 %1795  ;;  %1616 = vmatprep.mubr.bf16.mxu0 %v2208_v2 }
 0x310   : > { %v1801_v14 = vsel %vm1050_vm10, %v1796_v3, %v1798_v0 }
 0x311   : > { %2117 = vmatmul.mubr.msk.bf16.vlgmr.msra.gmra.mrb[28].mxu1 %vm1288_vm12, %v2112_v1  ;;  %v1807_v19 = vsel %vm1292_vm11, %v1801_v14, 0 }
 0x312   : > { %1696 = vmatprep.mubr.bf16.mxu1 %v2208_v2 }
 0x313   : > { %v1650_v4 = vpop.permute.xlu1 %1649  ;;  %v1648_v39 = vpop.permute.xlu0 %1647 }
 0x314   : > { %v1654_v6 = vsel %vm739_vm3, %v1650_v4, %v1652_v27  ;;  %v1653_v7 = vsel %vm739_vm3, %v1648_v39, %v1650_v4 }
 0x315   : > { %2127 = vmatprep.subr.msk.bf16.mxu1 %vm1292_vm11, %v1654_v6  ;;  %v1659_v8 = vsel %vm1292_vm11, %v1653_v7, 0  ;;  %2122 = vmatmul.mubr.msk.bf16.vlgmr.msra.gmra.mrb[24].mxu0 %vm1288_vm12, %v2118_v5 }
 0x316   : > { %1665 = vmatpush1.bf16.msra.mxu1 %v1659_v8  ;;  %1774 = vmatprep.mubr.bf16.mxu0 %v2208_v2 }
 0x317   : > { %v1726_v9 = vpop.permute.xlu1 %1725  ;;  %v1728_v10 = vpop.permute.xlu0 %1727 }
 0x318   : > { %v1732_v11 = vsel %vm659_vm2, %v1728_v10, %v2545_v26  ;;  %v1731_v12 = vsel %vm659_vm2, %v1726_v9, %v1728_v10 }
 0x319   : > { %v1737_v13 = vsel %vm1292_vm11, %v1731_v12, 0  ;;  %2128 = vmatmul.mubr.msk.bf16.vlgmr.msra.gmra.mrb[32].mxu1 %vm1288_vm12, %v2123_v38  ;;  %2133 = vmatprep.subr.msk.bf16.mxu0 %vm1292_vm11, %v1732_v11 }
 0x31a   : > { %1743 = vmatpush1.bf16.msra.mxu0 %v1737_v13  ;;  %1844 = vmatprep.mubr.bf16.mxu1 %v2208_v2 }
 0x31b   : > { %v1874_v15 = vpop.permute.xlu1 %1873  ;;  %v1800_v17 = vpop.permute.xlu0 %1799 }
 0x31c   : > { %v1802_v18 = vsel %vm1050_vm10, %v1798_v0, %v1800_v17 }
 0x31d   : > { %2134 = vmatmul.mubr.msk.bf16.vlgmr.msra.gmra.mrb[28].mxu0 %vm1288_vm12, %v2129_v16  ;;  %2139 = vmatprep.subr.msk.bf16.mxu1 %vm1292_vm11, %v1802_v18 }
 0x31e   : > { %1813 = vmatpush1.bf16.msra.mxu1 %v1807_v19  ;;  %1922 = vmatprep.mubr.bf16.mxu0 %v2208_v2 }
 0x31f   : > { %v1878_v44 = vpop.permute.xlu1 %1877  ;;  %v1876_v21 = vpop.permute.xlu0 %1875 }
 0x320   : > { %v1879_v40 = vsel %vm506_vm1, %v1874_v15, %v1876_v21  ;;  %v1880_v43 = vsel %vm506_vm1, %v1876_v21, %v1878_v44 }
 0x321   : > { %v1885_v22 = vsel %vm1292_vm11, %v1879_v40, 0  ;;  %2140 = vmatmul.mubr.msk.bf16.vlgmr.msra.gmra.mrb[36].mxu1 %vm1288_vm12, %v2135_v20  ;;  %2145 = vmatprep.subr.msk.bf16.mxu0 %vm1292_vm11, %v1880_v43 }
 0x322   : > { %1891 = vmatpush1.bf16.msra.mxu0 %v1885_v22 }
 0x325   : > { %2146 = vmatmul.mubr.msk.bf16.vlgmr.msra.gmra.mrb[32].mxu0 %vm1288_vm12, %v2141_v23 }
 0x330   : > { %v1937_v12 = vpop.permute.xlu0 %1936 }
 0x3d4   : > { %v1333_v24 = vpop.f32.mrb[16].mxu0 }
 0x3d5   : > { %v1335_v2 = vpop.f32.mrb[17].mxu0 }
 0x3d6   : > { %v1337_v25 = vpop.f32.mrb[18].mxu0 }
 0x3d7   : > { %v1338_v26 = vpop.f32.mrb[19].mxu0 }
 0x3d8   : > { %v1399_v27 = vpop.f32.mrb[24].mxu1 }
 0x3d9   : > { %v1400_v45 = vadd.f32 %v1399_v27, %v1333_v24  ;;  %v1401_v28 = vpop.f32.mrb[25].mxu1 }
 0x3da   : > { %v1402_v29 = vadd.f32 %v1401_v28, %v1335_v2  ;;  %v1403_v30 = vpop.f32.mrb[26].mxu1 }
 0x3db   : > { %v1404_v31 = vpop.f32.mrb[27].mxu1 }
 0x3e0   : > { %v1480_v32 = vpop.f32.mrb[20].mxu0 }
 0x3e1   : > { %v1487_v34 = vadd.f32 %v1480_v32, %v1400_v45  ;;  %v1482_v41 = vpop.f32.mrb[21].mxu0 }
 0x3e2   : > { %v1488_v42 = vadd.f32 %v1482_v41, %v1402_v29  ;;  %v1484_v46 = vpop.f32.mrb[22].mxu0 }
 0x3e3   : > { %v1485_v33 = vpop.f32.mrb[23].mxu0 }
 0x3e4   : > { %v1558_v36 = vpop.f32.mrb[28].mxu1 }
 0x3e5   : > { %v1565_v47 = vadd.f32 %v1558_v36, %v1487_v34  ;;  %v1560_v48 = vpop.f32.mrb[29].mxu1 }
 0x3e6   : > { %v1566_v49 = vadd.f32 %v1560_v48, %v1488_v42  ;;  %v1562_v50 = vpop.f32.mrb[30].mxu1 }
 0x3e7   : > { %v1563_v51 = vpop.f32.mrb[31].mxu1 }
 0x3e8   : > { %v1618_v52 = vpop.f32.mrb[24].mxu0 }
 0x3e9   : > { %v1625_v53 = vadd.f32 %v1618_v52, %v1565_v47  ;;  %v1620_v54 = vpop.f32.mrb[25].mxu0 }
 0x3ea   : > { %v1626_v55 = vadd.f32 %v1620_v54, %v1566_v49  ;;  %v1622_v56 = vpop.f32.mrb[26].mxu0 }
 0x3eb   : > { %v1623_v57 = vpop.f32.mrb[27].mxu0 }
 0x3ec   : > { %v1698_v35 = vpop.f32.mrb[32].mxu1 }
 0x3ed   : > { %v1705_v58 = vadd.f32 %v1698_v35, %v1625_v53  ;;  %v1700_v59 = vpop.f32.mrb[33].mxu1 }
 0x3ee   : > { %v1706_v60 = vadd.f32 %v1700_v59, %v1626_v55  ;;  %v1702_v37 = vpop.f32.mrb[34].mxu1 }
 0x3ef   : > { %v1703_v61 = vpop.f32.mrb[35].mxu1 }
 0x3f0   : > { %v1776_v62 = vpop.f32.mrb[28].mxu0 }
 0x3f1   : > { %v1783_v63 = vadd.f32 %v1776_v62, %v1705_v58  ;;  %v1778_v0 = vpop.f32.mrb[29].mxu0 }
 0x3f2   : > { %v1784_v1 = vadd.f32 %v1778_v0, %v1706_v60  ;;  %v1780_v3 = vpop.f32.mrb[30].mxu0 }
 0x3f3   : > { %v1781_v4 = vpop.f32.mrb[31].mxu0 }
 0x3f4   : > { %v1846_v5 = vpop.f32.mrb[36].mxu1 }
 0x3f5   : > { %v1853_v39 = vadd.f32 %v1846_v5, %v1783_v63  ;;  %v1848_v6 = vpop.f32.mrb[37].mxu1 }
 0x3f6   : > { %v1854_v7 = vadd.f32 %v1848_v6, %v1784_v1  ;;  %v1850_v8 = vpop.f32.mrb[38].mxu1 }
 0x3f7   : > { %v1851_v9 = vpop.f32.mrb[39].mxu1 }
 0x3f8   : > { %v1924_v38 = vpop.f32.mrb[32].mxu0 }
 0x3f9   : > { %v1931_v10 = vadd.f32 %v1924_v38, %v1853_v39  ;;  %v1926_v11 = vpop.f32.mrb[33].mxu0 }
 0x3fa   : > { %v1932_v13 = vadd.f32 %v1926_v11, %v1854_v7  ;;  %v1928_v14 = vpop.f32.mrb[34].mxu0 }
 0x3fb   : > { %v1939_v15 = vadd.f32 %v1937_v12, %v1931_v10  ;;  %v1929_v16 = vpop.f32.mrb[35].mxu0 }
 0x3fc   : > { %v1940_v17 = vadd.f32 %v1937_v12, %v1932_v13 }
 0x3fd   : > { %v1941_v18 = vmax.f32 %v1939_v15, 0.0 }
 0x3fe   : > { %v1942_v19 = vmax.f32 %v1940_v17, 0.0 }
 0x400   : > { %v1945_v44 = vcombine.low %v1941_v18, %v1942_v19 }
 0x402   : > { %1947 = vst [vmem:[%s322_s16] sm:$0xff] %v1945_v44 }
 0x403 PF: > { %s18_s27 = sadd.s32 1, %s2206_s27  }
 0x404   : > { %p15_p4 = scmp.ge.s32.totalorder %s18_s27, 4  }
 0x406   :  { %17 = sbr.rel (!%p15_p4) target bundleno = 1 (0x1), region = 101 }

</bundles_post_ra>
